<compile_context>
chip_gen: v6e
topology: v6e:2x2x1
jax: 0.10.0
libtpu: 0.0.40
codegen_flags: <defaults>
</compile_context>

<pallas_src>
import functools

import jax
import jax.numpy as jnp
from jax.experimental import pallas as pl
from jax.experimental.pallas import tpu as pltpu

EXPANSION = 4
BN_EPS = 1e-5


def _round_up(v, m):
    return (v + m - 1) // m * m


# --------------------------------------------------------------------------
# Fused kernel: one grid step = one image; everything stays VMEM-resident.
# --------------------------------------------------------------------------
def _bottleneck_kernel(x_ref, w1_ref, w2_ref, w3_ref,
                       s1_ref, b1_ref, s2_ref, b2_ref, s3_ref, b3_ref,
                       o_ref, hpad_ref):
    _, H, W, Cp = x_ref.shape          # padded channels Cp (multiple of 128)
    Pp = w1_ref.shape[1]               # padded planes
    HW = H * W

    x = x_ref[0]                                   # (H, W, Cp) f32
    x2d = x.reshape(HW, Cp)
    xb = x2d.astype(jnp.bfloat16)

    # ---- conv1 (1x1) + bn1 + relu ---------------------------------------
    h1 = jnp.dot(xb, w1_ref[...], preferred_element_type=jnp.float32)
    h1 = jnp.maximum(h1 * s1_ref[...] + b1_ref[...], 0.0)       # (HW, Pp) f32

    # ---- conv2 (3x3, pad=1, stride=1) + bn2 + relu ------------------------
    # Zero-padded spatial buffer in VMEM -> 9 shifted taps, 9 matmuls.
    hpad_ref[...] = jnp.zeros((H + 2, W + 2, Pp), jnp.bfloat16)
    hpad_ref[pl.ds(1, H), pl.ds(1, W), :] = (
        h1.astype(jnp.bfloat16).reshape(H, W, Pp))

    acc = jnp.zeros((HW, Pp), jnp.float32)
    for ky in range(3):
        for kx in range(3):
            tap = hpad_ref[pl.ds(ky, H), pl.ds(kx, W), :].reshape(HW, Pp)
            acc = acc + jnp.dot(tap, w2_ref[ky * 3 + kx],
                                preferred_element_type=jnp.float32)
    h2 = jnp.maximum(acc * s2_ref[...] + b2_ref[...], 0.0)      # (HW, Pp) f32

    # ---- conv3 (1x1) + bn3 + identity residual + relu ---------------------
    h3 = jnp.dot(h2.astype(jnp.bfloat16), w3_ref[...],
                 preferred_element_type=jnp.float32)
    y = h3 * s3_ref[...] + b3_ref[...] + x2d                    # residual (f32)
    o_ref[...] = jnp.maximum(y, 0.0).reshape(1, H, W, Cp).astype(o_ref.dtype)


# --------------------------------------------------------------------------
# Glue: BN folding, channel padding, weight layout.
# --------------------------------------------------------------------------
def _fold_bn(gamma, beta, mean, var, eps=BN_EPS):
    scale = gamma / jnp.sqrt(var + eps)
    bias = beta - mean * scale
    return scale.astype(jnp.float32), bias.astype(jnp.float32)


def _pad_to(a, axis, target):
    pad = target - a.shape[axis]
    if pad <= 0:
        return a
    cfg = [(0, 0)] * a.ndim
    cfg[axis] = (0, pad)
    return jnp.pad(a, cfg)


@functools.partial(jax.jit, static_argnames=("stride",))
def bottleneck_forward(x_nchw, params, stride=1):
    if stride != 1:
        # TODO(synk): stride>1 requires the downsample branch (module default
        # is stride=1, downsample=None); not implemented here.
        raise NotImplementedError("fused kernel supports stride=1 / downsample=None")

    N, Cin, H, W = x_nchw.shape
    planes = params["w1"].shape[0]
    Cout = planes * EXPANSION
    assert Cin == Cout, "identity residual requires inplanes == planes * EXPANSION"

    Cp = _round_up(max(Cin, 128), 128)        # lane-dense channel dims
    Pp = _round_up(max(planes, 128), 128)

    # NCHW -> NHWC (+ zero channel padding).
    # TODO(synk): accept NHWC at the module boundary to drop this HBM pass.
    x = jnp.transpose(x_nchw, (0, 2, 3, 1)).astype(jnp.float32)
    x = _pad_to(x, 3, Cp)                                        # (N, H, W, Cp)

    # Weights as lane-dense bf16 matmul operands (padded channels are zero).
    w1 = _pad_to(_pad_to(jnp.transpose(params["w1"][:, :, 0, 0], (1, 0)), 0, Cp),
                 1, Pp).astype(jnp.bfloat16)                     # (Cp, Pp)
    w2 = jnp.transpose(params["w2"], (2, 3, 1, 0)).reshape(9, planes, planes)
    w2 = _pad_to(_pad_to(w2, 1, Pp), 2, Pp).astype(jnp.bfloat16)  # (9, Pp, Pp)
    w3 = _pad_to(_pad_to(jnp.transpose(params["w3"][:, :, 0, 0], (1, 0)), 0, Pp),
                 1, Cp).astype(jnp.bfloat16)                     # (Pp, Cp)

    # Eval-mode BN folded to scale/bias; zero on padded channels so the
    # padding stays exactly zero through every stage.
    s1, b1 = _fold_bn(*params["bn1"])
    s2, b2 = _fold_bn(*params["bn2"])
    s3, b3 = _fold_bn(*params["bn3"])
    s1 = _pad_to(s1, 0, Pp).reshape(1, Pp); b1 = _pad_to(b1, 0, Pp).reshape(1, Pp)
    s2 = _pad_to(s2, 0, Pp).reshape(1, Pp); b2 = _pad_to(b2, 0, Pp).reshape(1, Pp)
    s3 = _pad_to(s3, 0, Cp).reshape(1, Cp); b3 = _pad_to(b3, 0, Cp).reshape(1, Cp)

    HW = H * W
    flops = 2 * N * HW * (Cp * Pp + 9 * Pp * Pp + Pp * Cp)
    bytes_accessed = (2 * N * HW * Cp * 4                        # x in + out
                      + (Cp * Pp + 9 * Pp * Pp + Pp * Cp) * 2    # bf16 weights
                      + 2 * (2 * Pp + Cp) * 4)                   # bn scale/bias

    out = pl.pallas_call(
        _bottleneck_kernel,
        out_shape=jax.ShapeDtypeStruct((N, H, W, Cp), jnp.float32),
        grid_spec=pltpu.PrefetchScalarGridSpec(
            num_scalar_prefetch=0,
            grid=(N,),
            in_specs=[
                pl.BlockSpec((1, H, W, Cp), lambda n: (n, 0, 0, 0)),   # x
                pl.BlockSpec((Cp, Pp), lambda n: (0, 0)),              # w1
                pl.BlockSpec((9, Pp, Pp), lambda n: (0, 0, 0)),        # w2 taps
                pl.BlockSpec((Pp, Cp), lambda n: (0, 0)),              # w3
                pl.BlockSpec((1, Pp), lambda n: (0, 0)),               # s1
                pl.BlockSpec((1, Pp), lambda n: (0, 0)),               # b1
                pl.BlockSpec((1, Pp), lambda n: (0, 0)),               # s2
                pl.BlockSpec((1, Pp), lambda n: (0, 0)),               # b2
                pl.BlockSpec((1, Cp), lambda n: (0, 0)),               # s3
                pl.BlockSpec((1, Cp), lambda n: (0, 0)),               # b3
            ],
            out_specs=pl.BlockSpec((1, H, W, Cp), lambda n: (n, 0, 0, 0)),
            scratch_shapes=[pltpu.VMEM((H + 2, W + 2, Pp), jnp.bfloat16)],
        ),
        compiler_params=pltpu.CompilerParams(
            dimension_semantics=("parallel",),
            vmem_limit_bytes=48 * 1024 * 1024),
        cost_estimate=pl.CostEstimate(
            flops=flops, transcendentals=0, bytes_accessed=bytes_accessed),
    )(x, w1, w2, w3, s1, b1, s2, b2, s3, b3)

    out = out[..., :Cout]                          # drop channel padding
    return jnp.transpose(out, (0, 3, 1, 2))        # NHWC -> NCHW


# --------------------------------------------------------------------------
# Pure-JAX f32 reference (lax.conv) for correctness check.
# --------------------------------------------------------------------------
def _ref_forward(x, params, stride=1):
    def conv(x, w, stride, padding):
        return jax.lax.conv_general_dilated(
            x, w, window_strides=(stride, stride), padding=padding,
            dimension_numbers=("NCHW", "OIHW", "NCHW"))

    def bn(x, p):
        gamma, beta, mean, var = p
        s = gamma / jnp.sqrt(var + BN_EPS)
        return x * s[None, :, None, None] + (beta - mean * s)[None, :, None, None]

    out = jnp.maximum(bn(conv(x, params["w1"], 1, "VALID"), params["bn1"]), 0.0)
    out = jnp.maximum(bn(conv(out, params["w2"], stride, [(1, 1), (1, 1)]),
                         params["bn2"]), 0.0)
    out = bn(conv(out, params["w3"], 1, "VALID"), params["bn3"])
    return jnp.maximum(out + x, 0.0)


# --------------------------------------------------------------------------
def _init_params(key, inplanes, planes):
    ks = jax.random.split(key, 6)
    outc = planes * EXPANSION

    def bn_params(k, c):
        k1, k2, k3 = jax.random.split(k, 3)
        gamma = jax.random.uniform(k1, (c,), jnp.float32, 0.5, 1.5)
        beta = jax.random.normal(k2, (c,), jnp.float32) * 0.1
        mean = jax.random.normal(k3, (c,), jnp.float32) * 0.1
        var = jnp.ones((c,), jnp.float32) * 0.9
        return (gamma, beta, mean, var)

    return {
        "w1": jax.random.normal(ks[0], (planes, inplanes, 1, 1), jnp.float32) * 0.1,
        "w2": jax.random.normal(ks[1], (planes, planes, 3, 3), jnp.float32) * 0.1,
        "w3": jax.random.normal(ks[2], (outc, planes, 1, 1), jnp.float32) * 0.1,
        "bn1": bn_params(ks[3], planes),
        "bn2": bn_params(ks[4], planes),
        "bn3": bn_params(ks[5], outc),
    }


if __name__ == "__main__":
    key = jax.random.PRNGKey(0)
    kx, kp = jax.random.split(key)

    batch, planes = 2, 4
    inplanes = planes * EXPANSION        # 16, so identity residual is valid
    H = W = 8

    x = jax.random.normal(kx, (batch, inplanes, H, W), jnp.float32)
    params = _init_params(kp, inplanes, planes)

    out = bottleneck_forward(x, params, stride=1)
    out = jax.block_until_ready(out)

    ref = _ref_forward(x, params, stride=1)
    assert out.shape == (batch, inplanes, H, W)
    # bf16 MXU operands (f32 accumulation) vs. pure-f32 reference -> loose tol.
    assert jnp.allclose(out, ref, atol=5e-2, rtol=5e-2), \
        f"max err {jnp.max(jnp.abs(out - ref))}"

    print("KERNEL_OK")
</pallas_src>

<mosaic_0001>
module attributes {stable_mosaic.version = 11 : i64} {
  func.func @_bottleneck_kernel(%arg0: i32, %arg1: memref<1x8x8x128xf32, #tpu.memory_space<vmem>>, %arg2: memref<128x128xbf16, #tpu.memory_space<vmem>>, %arg3: memref<9x128x128xbf16, #tpu.memory_space<vmem>>, %arg4: memref<128x128xbf16, #tpu.memory_space<vmem>>, %arg5: memref<1x128xf32, #tpu.memory_space<vmem>>, %arg6: memref<1x128xf32, #tpu.memory_space<vmem>>, %arg7: memref<1x128xf32, #tpu.memory_space<vmem>>, %arg8: memref<1x128xf32, #tpu.memory_space<vmem>>, %arg9: memref<1x128xf32, #tpu.memory_space<vmem>>, %arg10: memref<1x128xf32, #tpu.memory_space<vmem>>, %arg11: memref<1x8x8x128xf32, #tpu.memory_space<vmem>>, %arg12: memref<10x10x128xbf16, #tpu.memory_space<vmem>>) attributes {dimension_semantics = [#tpu.dimension_semantics<parallel>], iteration_bounds = array<i64: 2>, scalar_prefetch = 0 : i64, scratch_operands = 1 : i64, tpu.core_type = #tpu.core_type<tc>, window_params = [{transform_indices = @transform_0, window_bounds = array<i64: 1, 8, 8, 128>}, {pipeline_mode = #tpu.pipeline_mode<synchronous>, transform_indices = @transform_1, window_bounds = array<i64: 128, 128>}, {pipeline_mode = #tpu.pipeline_mode<synchronous>, transform_indices = @transform_2, window_bounds = array<i64: 9, 128, 128>}, {pipeline_mode = #tpu.pipeline_mode<synchronous>, transform_indices = @transform_3, window_bounds = array<i64: 128, 128>}, {pipeline_mode = #tpu.pipeline_mode<synchronous>, transform_indices = @transform_4, window_bounds = array<i64: 1, 128>}, {pipeline_mode = #tpu.pipeline_mode<synchronous>, transform_indices = @transform_5, window_bounds = array<i64: 1, 128>}, {pipeline_mode = #tpu.pipeline_mode<synchronous>, transform_indices = @transform_6, window_bounds = array<i64: 1, 128>}, {pipeline_mode = #tpu.pipeline_mode<synchronous>, transform_indices = @transform_7, window_bounds = array<i64: 1, 128>}, {pipeline_mode = #tpu.pipeline_mode<synchronous>, transform_indices = @transform_8, window_bounds = array<i64: 1, 128>}, {pipeline_mode = #tpu.pipeline_mode<synchronous>, transform_indices = @transform_9, window_bounds = array<i64: 1, 128>}, {transform_indices = @transform_10, window_bounds = array<i64: 1, 8, 8, 128>}]} {
    %c0 = arith.constant 0 : index
    %c0_0 = arith.constant 0 : index
    %c0_1 = arith.constant 0 : index
    %c0_2 = arith.constant 0 : index
    %0 = vector.load %arg1[%c0, %c0_0, %c0_1, %c0_2] : memref<1x8x8x128xf32, #tpu.memory_space<vmem>>, vector<1x8x8x128xf32>
    %1 = vector.shape_cast %0 : vector<1x8x8x128xf32> to vector<8x8x128xf32>
    %2 = vector.shape_cast %1 : vector<8x8x128xf32> to vector<64x128xf32>
    %3 = arith.truncf %2 : vector<64x128xf32> to vector<64x128xbf16>
    %c0_3 = arith.constant 0 : index
    %c0_4 = arith.constant 0 : index
    %4 = vector.load %arg2[%c0_3, %c0_4] : memref<128x128xbf16, #tpu.memory_space<vmem>>, vector<128x128xbf16>
    %cst = arith.constant dense<0.000000e+00> : vector<64x128xf32>
    %5 = tpu.matmul %3, %4, %cst {dimension_numbers = #tpu.dot_dimension_numbers<[1], [0], [0], [1], [0, 0, 1, 1], [], []>} : vector<64x128xbf16>, vector<128x128xbf16>, vector<64x128xf32> -> vector<64x128xf32>
    %c0_5 = arith.constant 0 : index
    %c0_6 = arith.constant 0 : index
    %6 = vector.load %arg5[%c0_5, %c0_6] : memref<1x128xf32, #tpu.memory_space<vmem>>, vector<1x128xf32>
    %7 = vector.broadcast %6 : vector<1x128xf32> to vector<64x128xf32>
    %8 = arith.mulf %5, %7 : vector<64x128xf32>
    %c0_7 = arith.constant 0 : index
    %c0_8 = arith.constant 0 : index
    %9 = vector.load %arg6[%c0_7, %c0_8] : memref<1x128xf32, #tpu.memory_space<vmem>>, vector<1x128xf32>
    %10 = vector.broadcast %9 : vector<1x128xf32> to vector<64x128xf32>
    %11 = arith.addf %8, %10 : vector<64x128xf32>
    %cst_9 = arith.constant 0.000000e+00 : f32
    %12 = vector.broadcast %cst_9 : f32 to vector<64x128xf32>
    %13 = arith.maximumf %11, %12 : vector<64x128xf32>
    %cst_10 = arith.constant 0.000000e+00 : bf16
    %14 = vector.broadcast %cst_10 : bf16 to vector<10x10x128xbf16>
    %c0_11 = arith.constant 0 : index
    %c0_12 = arith.constant 0 : index
    %c0_13 = arith.constant 0 : index
    %15 = vector.load %arg12[%c0_11, %c0_12, %c0_13] : memref<10x10x128xbf16, #tpu.memory_space<vmem>>, vector<10x10x128xbf16>
    tpu.vector_store %arg12[%c0_11, %c0_12, %c0_13], %14 {strides = array<i32>} : memref<10x10x128xbf16, #tpu.memory_space<vmem>>, vector<10x10x128xbf16>,
    %16 = arith.truncf %13 : vector<64x128xf32> to vector<64x128xbf16>
    %17 = vector.shape_cast %16 : vector<64x128xbf16> to vector<8x8x128xbf16>
    %c1 = arith.constant 1 : index
    %c1_14 = arith.constant 1 : index
    %c0_15 = arith.constant 0 : index
    %18 = vector.load %arg12[%c1, %c1_14, %c0_15] : memref<10x10x128xbf16, #tpu.memory_space<vmem>>, vector<8x8x128xbf16>
    tpu.vector_store %arg12[%c1, %c1_14, %c0_15], %17 {strides = array<i32>} : memref<10x10x128xbf16, #tpu.memory_space<vmem>>, vector<8x8x128xbf16>,
    %cst_16 = arith.constant 0.000000e+00 : f32
    %19 = vector.broadcast %cst_16 : f32 to vector<64x128xf32>
    %c0_17 = arith.constant 0 : index
    %c0_18 = arith.constant 0 : index
    %c0_19 = arith.constant 0 : index
    %20 = vector.load %arg12[%c0_17, %c0_18, %c0_19] : memref<10x10x128xbf16, #tpu.memory_space<vmem>>, vector<8x8x128xbf16>
    %21 = vector.shape_cast %20 : vector<8x8x128xbf16> to vector<64x128xbf16>
    %c0_20 = arith.constant 0 : index
    %c0_21 = arith.constant 0 : index
    %c0_22 = arith.constant 0 : index
    %22 = vector.load %arg3[%c0_20, %c0_21, %c0_22] : memref<9x128x128xbf16, #tpu.memory_space<vmem>>, vector<1x128x128xbf16>
    %23 = vector.shape_cast %22 : vector<1x128x128xbf16> to vector<128x128xbf16>
    %cst_23 = arith.constant dense<0.000000e+00> : vector<64x128xf32>
    %24 = tpu.matmul %21, %23, %cst_23 {dimension_numbers = #tpu.dot_dimension_numbers<[1], [0], [0], [1], [0, 0, 1, 1], [], []>} : vector<64x128xbf16>, vector<128x128xbf16>, vector<64x128xf32> -> vector<64x128xf32>
    %25 = arith.addf %19, %24 : vector<64x128xf32>
    %c0_24 = arith.constant 0 : index
    %c1_25 = arith.constant 1 : index
    %c0_26 = arith.constant 0 : index
    %26 = vector.load %arg12[%c0_24, %c1_25, %c0_26] : memref<10x10x128xbf16, #tpu.memory_space<vmem>>, vector<8x8x128xbf16>
    %27 = vector.shape_cast %26 : vector<8x8x128xbf16> to vector<64x128xbf16>
    %c1_27 = arith.constant 1 : index
    %c0_28 = arith.constant 0 : index
    %c0_29 = arith.constant 0 : index
    %28 = vector.load %arg3[%c1_27, %c0_28, %c0_29] : memref<9x128x128xbf16, #tpu.memory_space<vmem>>, vector<1x128x128xbf16>
    %29 = vector.shape_cast %28 : vector<1x128x128xbf16> to vector<128x128xbf16>
    %cst_30 = arith.constant dense<0.000000e+00> : vector<64x128xf32>
    %30 = tpu.matmul %27, %29, %cst_30 {dimension_numbers = #tpu.dot_dimension_numbers<[1], [0], [0], [1], [0, 0, 1, 1], [], []>} : vector<64x128xbf16>, vector<128x128xbf16>, vector<64x128xf32> -> vector<64x128xf32>
    %31 = arith.addf %25, %30 : vector<64x128xf32>
    %c0_31 = arith.constant 0 : index
    %c2 = arith.constant 2 : index
    %c0_32 = arith.constant 0 : index
    %32 = vector.load %arg12[%c0_31, %c2, %c0_32] : memref<10x10x128xbf16, #tpu.memory_space<vmem>>, vector<8x8x128xbf16>
    %33 = vector.shape_cast %32 : vector<8x8x128xbf16> to vector<64x128xbf16>
    %c2_33 = arith.constant 2 : index
    %c0_34 = arith.constant 0 : index
    %c0_35 = arith.constant 0 : index
    %34 = vector.load %arg3[%c2_33, %c0_34, %c0_35] : memref<9x128x128xbf16, #tpu.memory_space<vmem>>, vector<1x128x128xbf16>
    %35 = vector.shape_cast %34 : vector<1x128x128xbf16> to vector<128x128xbf16>
    %cst_36 = arith.constant dense<0.000000e+00> : vector<64x128xf32>
    %36 = tpu.matmul %33, %35, %cst_36 {dimension_numbers = #tpu.dot_dimension_numbers<[1], [0], [0], [1], [0, 0, 1, 1], [], []>} : vector<64x128xbf16>, vector<128x128xbf16>, vector<64x128xf32> -> vector<64x128xf32>
    %37 = arith.addf %31, %36 : vector<64x128xf32>
    %c1_37 = arith.constant 1 : index
    %c0_38 = arith.constant 0 : index
    %c0_39 = arith.constant 0 : index
    %38 = vector.load %arg12[%c1_37, %c0_38, %c0_39] : memref<10x10x128xbf16, #tpu.memory_space<vmem>>, vector<8x8x128xbf16>
    %39 = vector.shape_cast %38 : vector<8x8x128xbf16> to vector<64x128xbf16>
    %c3 = arith.constant 3 : index
    %c0_40 = arith.constant 0 : index
    %c0_41 = arith.constant 0 : index
    %40 = vector.load %arg3[%c3, %c0_40, %c0_41] : memref<9x128x128xbf16, #tpu.memory_space<vmem>>, vector<1x128x128xbf16>
    %41 = vector.shape_cast %40 : vector<1x128x128xbf16> to vector<128x128xbf16>
    %cst_42 = arith.constant dense<0.000000e+00> : vector<64x128xf32>
    %42 = tpu.matmul %39, %41, %cst_42 {dimension_numbers = #tpu.dot_dimension_numbers<[1], [0], [0], [1], [0, 0, 1, 1], [], []>} : vector<64x128xbf16>, vector<128x128xbf16>, vector<64x128xf32> -> vector<64x128xf32>
    %43 = arith.addf %37, %42 : vector<64x128xf32>
    %c1_43 = arith.constant 1 : index
    %c1_44 = arith.constant 1 : index
    %c0_45 = arith.constant 0 : index
    %44 = vector.load %arg12[%c1_43, %c1_44, %c0_45] : memref<10x10x128xbf16, #tpu.memory_space<vmem>>, vector<8x8x128xbf16>
    %45 = vector.shape_cast %44 : vector<8x8x128xbf16> to vector<64x128xbf16>
    %c4 = arith.constant 4 : index
    %c0_46 = arith.constant 0 : index
    %c0_47 = arith.constant 0 : index
    %46 = vector.load %arg3[%c4, %c0_46, %c0_47] : memref<9x128x128xbf16, #tpu.memory_space<vmem>>, vector<1x128x128xbf16>
    %47 = vector.shape_cast %46 : vector<1x128x128xbf16> to vector<128x128xbf16>
    %cst_48 = arith.constant dense<0.000000e+00> : vector<64x128xf32>
    %48 = tpu.matmul %45, %47, %cst_48 {dimension_numbers = #tpu.dot_dimension_numbers<[1], [0], [0], [1], [0, 0, 1, 1], [], []>} : vector<64x128xbf16>, vector<128x128xbf16>, vector<64x128xf32> -> vector<64x128xf32>
    %49 = arith.addf %43, %48 : vector<64x128xf32>
    %c1_49 = arith.constant 1 : index
    %c2_50 = arith.constant 2 : index
    %c0_51 = arith.constant 0 : index
    %50 = vector.load %arg12[%c1_49, %c2_50, %c0_51] : memref<10x10x128xbf16, #tpu.memory_space<vmem>>, vector<8x8x128xbf16>
    %51 = vector.shape_cast %50 : vector<8x8x128xbf16> to vector<64x128xbf16>
    %c5 = arith.constant 5 : index
    %c0_52 = arith.constant 0 : index
    %c0_53 = arith.constant 0 : index
    %52 = vector.load %arg3[%c5, %c0_52, %c0_53] : memref<9x128x128xbf16, #tpu.memory_space<vmem>>, vector<1x128x128xbf16>
    %53 = vector.shape_cast %52 : vector<1x128x128xbf16> to vector<128x128xbf16>
    %cst_54 = arith.constant dense<0.000000e+00> : vector<64x128xf32>
    %54 = tpu.matmul %51, %53, %cst_54 {dimension_numbers = #tpu.dot_dimension_numbers<[1], [0], [0], [1], [0, 0, 1, 1], [], []>} : vector<64x128xbf16>, vector<128x128xbf16>, vector<64x128xf32> -> vector<64x128xf32>
    %55 = arith.addf %49, %54 : vector<64x128xf32>
    %c2_55 = arith.constant 2 : index
    %c0_56 = arith.constant 0 : index
    %c0_57 = arith.constant 0 : index
    %56 = vector.load %arg12[%c2_55, %c0_56, %c0_57] : memref<10x10x128xbf16, #tpu.memory_space<vmem>>, vector<8x8x128xbf16>
    %57 = vector.shape_cast %56 : vector<8x8x128xbf16> to vector<64x128xbf16>
    %c6 = arith.constant 6 : index
    %c0_58 = arith.constant 0 : index
    %c0_59 = arith.constant 0 : index
    %58 = vector.load %arg3[%c6, %c0_58, %c0_59] : memref<9x128x128xbf16, #tpu.memory_space<vmem>>, vector<1x128x128xbf16>
    %59 = vector.shape_cast %58 : vector<1x128x128xbf16> to vector<128x128xbf16>
    %cst_60 = arith.constant dense<0.000000e+00> : vector<64x128xf32>
    %60 = tpu.matmul %57, %59, %cst_60 {dimension_numbers = #tpu.dot_dimension_numbers<[1], [0], [0], [1], [0, 0, 1, 1], [], []>} : vector<64x128xbf16>, vector<128x128xbf16>, vector<64x128xf32> -> vector<64x128xf32>
    %61 = arith.addf %55, %60 : vector<64x128xf32>
    %c2_61 = arith.constant 2 : index
    %c1_62 = arith.constant 1 : index
    %c0_63 = arith.constant 0 : index
    %62 = vector.load %arg12[%c2_61, %c1_62, %c0_63] : memref<10x10x128xbf16, #tpu.memory_space<vmem>>, vector<8x8x128xbf16>
    %63 = vector.shape_cast %62 : vector<8x8x128xbf16> to vector<64x128xbf16>
    %c7 = arith.constant 7 : index
    %c0_64 = arith.constant 0 : index
    %c0_65 = arith.constant 0 : index
    %64 = vector.load %arg3[%c7, %c0_64, %c0_65] : memref<9x128x128xbf16, #tpu.memory_space<vmem>>, vector<1x128x128xbf16>
    %65 = vector.shape_cast %64 : vector<1x128x128xbf16> to vector<128x128xbf16>
    %cst_66 = arith.constant dense<0.000000e+00> : vector<64x128xf32>
    %66 = tpu.matmul %63, %65, %cst_66 {dimension_numbers = #tpu.dot_dimension_numbers<[1], [0], [0], [1], [0, 0, 1, 1], [], []>} : vector<64x128xbf16>, vector<128x128xbf16>, vector<64x128xf32> -> vector<64x128xf32>
    %67 = arith.addf %61, %66 : vector<64x128xf32>
    %c2_67 = arith.constant 2 : index
    %c2_68 = arith.constant 2 : index
    %c0_69 = arith.constant 0 : index
    %68 = vector.load %arg12[%c2_67, %c2_68, %c0_69] : memref<10x10x128xbf16, #tpu.memory_space<vmem>>, vector<8x8x128xbf16>
    %69 = vector.shape_cast %68 : vector<8x8x128xbf16> to vector<64x128xbf16>
    %c8 = arith.constant 8 : index
    %c0_70 = arith.constant 0 : index
    %c0_71 = arith.constant 0 : index
    %70 = vector.load %arg3[%c8, %c0_70, %c0_71] : memref<9x128x128xbf16, #tpu.memory_space<vmem>>, vector<1x128x128xbf16>
    %71 = vector.shape_cast %70 : vector<1x128x128xbf16> to vector<128x128xbf16>
    %cst_72 = arith.constant dense<0.000000e+00> : vector<64x128xf32>
    %72 = tpu.matmul %69, %71, %cst_72 {dimension_numbers = #tpu.dot_dimension_numbers<[1], [0], [0], [1], [0, 0, 1, 1], [], []>} : vector<64x128xbf16>, vector<128x128xbf16>, vector<64x128xf32> -> vector<64x128xf32>
    %73 = arith.addf %67, %72 : vector<64x128xf32>
    %c0_73 = arith.constant 0 : index
    %c0_74 = arith.constant 0 : index
    %74 = vector.load %arg7[%c0_73, %c0_74] : memref<1x128xf32, #tpu.memory_space<vmem>>, vector<1x128xf32>
    %75 = vector.broadcast %74 : vector<1x128xf32> to vector<64x128xf32>
    %76 = arith.mulf %73, %75 : vector<64x128xf32>
    %c0_75 = arith.constant 0 : index
    %c0_76 = arith.constant 0 : index
    %77 = vector.load %arg8[%c0_75, %c0_76] : memref<1x128xf32, #tpu.memory_space<vmem>>, vector<1x128xf32>
    %78 = vector.broadcast %77 : vector<1x128xf32> to vector<64x128xf32>
    %79 = arith.addf %76, %78 : vector<64x128xf32>
    %cst_77 = arith.constant 0.000000e+00 : f32
    %80 = vector.broadcast %cst_77 : f32 to vector<64x128xf32>
    %81 = arith.maximumf %79, %80 : vector<64x128xf32>
    %82 = arith.truncf %81 : vector<64x128xf32> to vector<64x128xbf16>
    %c0_78 = arith.constant 0 : index
    %c0_79 = arith.constant 0 : index
    %83 = vector.load %arg4[%c0_78, %c0_79] : memref<128x128xbf16, #tpu.memory_space<vmem>>, vector<128x128xbf16>
    %cst_80 = arith.constant dense<0.000000e+00> : vector<64x128xf32>
    %84 = tpu.matmul %82, %83, %cst_80 {dimension_numbers = #tpu.dot_dimension_numbers<[1], [0], [0], [1], [0, 0, 1, 1], [], []>} : vector<64x128xbf16>, vector<128x128xbf16>, vector<64x128xf32> -> vector<64x128xf32>
    %c0_81 = arith.constant 0 : index
    %c0_82 = arith.constant 0 : index
    %85 = vector.load %arg9[%c0_81, %c0_82] : memref<1x128xf32, #tpu.memory_space<vmem>>, vector<1x128xf32>
    %86 = vector.broadcast %85 : vector<1x128xf32> to vector<64x128xf32>
    %87 = arith.mulf %84, %86 : vector<64x128xf32>
    %c0_83 = arith.constant 0 : index
    %c0_84 = arith.constant 0 : index
    %88 = vector.load %arg10[%c0_83, %c0_84] : memref<1x128xf32, #tpu.memory_space<vmem>>, vector<1x128xf32>
    %89 = vector.broadcast %88 : vector<1x128xf32> to vector<64x128xf32>
    %90 = arith.addf %87, %89 : vector<64x128xf32>
    %91 = arith.addf %90, %2 : vector<64x128xf32>
    %cst_85 = arith.constant 0.000000e+00 : f32
    %92 = vector.broadcast %cst_85 : f32 to vector<64x128xf32>
    %93 = arith.maximumf %91, %92 : vector<64x128xf32>
    %94 = vector.shape_cast %93 : vector<64x128xf32> to vector<1x8x8x128xf32>
    %c0_86 = arith.constant 0 : index
    %c0_87 = arith.constant 0 : index
    %c0_88 = arith.constant 0 : index
    %c0_89 = arith.constant 0 : index
    %95 = vector.load %arg11[%c0_86, %c0_87, %c0_88, %c0_89] : memref<1x8x8x128xf32, #tpu.memory_space<vmem>>, vector<1x8x8x128xf32>
    tpu.vector_store %arg11[%c0_86, %c0_87, %c0_88, %c0_89], %94 {strides = array<i32>} : memref<1x8x8x128xf32, #tpu.memory_space<vmem>>, vector<1x8x8x128xf32>,
    return
  }
  func.func @transform_0(%arg0: i32) -> (i32, i32, i32, i32) {
    %c0_i32 = arith.constant 0 : i32
    %c0_i32_0 = arith.constant 0 : i32
    %c0_i32_1 = arith.constant 0 : i32
    %c0_i32_2 = arith.constant 0 : i32
    return %arg0, %c0_i32, %c0_i32_0, %c0_i32_1 : i32, i32, i32, i32
  }
  func.func @transform_1(%arg0: i32) -> (i32, i32) {
    %c0_i32 = arith.constant 0 : i32
    %c0_i32_0 = arith.constant 0 : i32
    %c0_i32_1 = arith.constant 0 : i32
    return %c0_i32, %c0_i32_0 : i32, i32
  }
  func.func @transform_2(%arg0: i32) -> (i32, i32, i32) {
    %c0_i32 = arith.constant 0 : i32
    %c0_i32_0 = arith.constant 0 : i32
    %c0_i32_1 = arith.constant 0 : i32
    %c0_i32_2 = arith.constant 0 : i32
    return %c0_i32, %c0_i32_0, %c0_i32_1 : i32, i32, i32
  }
  func.func @transform_3(%arg0: i32) -> (i32, i32) {
    %c0_i32 = arith.constant 0 : i32
    %c0_i32_0 = arith.constant 0 : i32
    %c0_i32_1 = arith.constant 0 : i32
    return %c0_i32, %c0_i32_0 : i32, i32
  }
  func.func @transform_4(%arg0: i32) -> (i32, i32) {
    %c0_i32 = arith.constant 0 : i32
    %c0_i32_0 = arith.constant 0 : i32
    %c0_i32_1 = arith.constant 0 : i32
    return %c0_i32, %c0_i32_0 : i32, i32
  }
  func.func @transform_5(%arg0: i32) -> (i32, i32) {
    %c0_i32 = arith.constant 0 : i32
    %c0_i32_0 = arith.constant 0 : i32
    %c0_i32_1 = arith.constant 0 : i32
    return %c0_i32, %c0_i32_0 : i32, i32
  }
  func.func @transform_6(%arg0: i32) -> (i32, i32) {
    %c0_i32 = arith.constant 0 : i32
    %c0_i32_0 = arith.constant 0 : i32
    %c0_i32_1 = arith.constant 0 : i32
    return %c0_i32, %c0_i32_0 : i32, i32
  }
  func.func @transform_7(%arg0: i32) -> (i32, i32) {
    %c0_i32 = arith.constant 0 : i32
    %c0_i32_0 = arith.constant 0 : i32
    %c0_i32_1 = arith.constant 0 : i32
    return %c0_i32, %c0_i32_0 : i32, i32
  }
  func.func @transform_8(%arg0: i32) -> (i32, i32) {
    %c0_i32 = arith.constant 0 : i32
    %c0_i32_0 = arith.constant 0 : i32
    %c0_i32_1 = arith.constant 0 : i32
    return %c0_i32, %c0_i32_0 : i32, i32
  }
  func.func @transform_9(%arg0: i32) -> (i32, i32) {
    %c0_i32 = arith.constant 0 : i32
    %c0_i32_0 = arith.constant 0 : i32
    %c0_i32_1 = arith.constant 0 : i32
    return %c0_i32, %c0_i32_0 : i32, i32
  }
  func.func @transform_10(%arg0: i32) -> (i32, i32, i32, i32) {
    %c0_i32 = arith.constant 0 : i32
    %c0_i32_0 = arith.constant 0 : i32
    %c0_i32_1 = arith.constant 0 : i32
    %c0_i32_2 = arith.constant 0 : i32
    return %arg0, %c0_i32, %c0_i32_0, %c0_i32_1 : i32, i32, i32, i32
  }
}

</mosaic_0001>

<bundles_post_ra>
// kernel: bottleneck_forward.1
= control target key start
LH: loop header
LB: loop body
LE: loop exit
PB: predicated region body
PF: predicated region fallthrough
CT: control target
= control target key end

     0   :  { %s3871_s13 = smov 0   ;;  %s4559_s0 = inlined_call_operand.vmem [shape: f32[2,8,8,128], index: 0, kind: input, shape index: {}]   ;;  %s4560_s1 = inlined_call_operand.vmem [shape: bf16[128,128], index: 1, kind: input, shape index: {}]   ;;  %s4561_s2 = inlined_call_operand.vmem [shape: bf16[9,128,128], index: 2, kind: input, shape index: {}]   ;;  %s4562_s3 = inlined_call_operand.vmem [shape: bf16[128,128], index: 3, kind: input, shape index: {}]   ;;  %s4563_s4 = inlined_call_operand.vmem [shape: f32[1,128], index: 4, kind: input, shape index: {}]   ;;  %s4564_s5 = inlined_call_operand.vmem [shape: f32[1,128], index: 5, kind: input, shape index: {}]   ;;  %s4565_s6 = inlined_call_operand.vmem [shape: f32[1,128], index: 6, kind: input, shape index: {}]   ;;  %s4566_s7 = inlined_call_operand.vmem [shape: f32[1,128], index: 7, kind: input, shape index: {}]   ;;  %s4567_s8 = inlined_call_operand.vmem [shape: f32[1,128], index: 8, kind: input, shape index: {}]   ;;  %s4568_s9 = inlined_call_operand.vmem [shape: f32[1,128], index: 9, kind: input, shape index: {}]   ;;  %s4569_s10 = inlined_call_operand.vmem [shape: f32[2,8,8,128], index: 10, kind: output, shape index: {}]  }
   0x1 LB: > { %s2967_s14 = sadd.s32 4294967295, %s3813_s13   ;;  %p2971_p0 = scmp.ge.s32.totalorder %s3813_s13, 1  ;;  %s3813_s13 = sphi %s3871_s13, %s20_s13  }
   0x2   : > { %p312_p1 = scmp.lt.s32.totalorder %s3813_s13, 3 }
   0x4   : > { %p313_p2 = pnand %p2971_p0, %p312_p1 }
   0x6   : > { %316 = sbr.rel (%p313_p2) target bundleno = 838 (0x346), region = 60 }
   0xb   : > { %v3699_v0 = vld [vmem:[%s4560_s1 + $0x38] sm:$0xff]   ;;  %p350_p3 = scmp.lt.s32.totalorder %s2967_s14, 1  ;;  %v3700_v1 = vld [vmem:[%s4560_s1 + $0x30] sm:$0xff]   ;;  %v3701_v2 = vld [vmem:[%s4560_s1 + $0x28] sm:$0xff]   ;;  %v3815_v22 = vmov 0   ;;  %vm665_vm0 = vcmask 1043456  }
   0xc   : > { %3410 = vmatprep.subr.bf16.mxu0 %v3699_v0  ;;  %v3702_v3 = vld [vmem:[%s4560_s1 + $0x20] sm:$0xff]   ;;  %v3703_v7 = vld [vmem:[%s4560_s1 + $0x18] sm:$0xff]   ;;  %v3704_v8 = vld [vmem:[%s4560_s1 + $0x10] sm:$0xff]   ;;  %546 = vst [vmem:[#allocation2 + $0x18] sm:$0xf] %v3815_v22  ;;  %vm671_vm2 = vcmask 1040384  }
   0xd   : > { %s4587_s14 = smov (!%p350_p3, %s2967_s14), 1  ;;  %3411 = vmatpush3.bf16.msra.mxu0 %v3699_v0  ;;  %v3705_v9 = vld [vmem:[%s4560_s1 + $0x8] sm:$0xff]   ;;  %v3706_v10 = vld [vmem:[%s4560_s1] sm:$0xff]   ;;  %v3707_v15 = vld [vmem:[%s4561_s2 + $0x38] sm:$0xff]   ;;  %547 = vst [vmem:[#allocation2 + $0x1c] sm:$0x1] %v3815_v22 }
   0xe   : > { %3412 = vmatprep.subr.bf16.mxu0 %v3700_v1  ;;  %s3268_s21 = sshll.u32 %s4587_s14, 6  ;;  %v3708_v21 = vld [vmem:[%s4561_s2 + $0x30] sm:$0xff]   ;;  %540 = vst [vmem:[#allocation2] sm:$0xf] %v3815_v22  ;;  %541 = vst [vmem:[#allocation2 + $0x4] sm:$0x1] %v3815_v22 }
   0xf   : > { %s3896_s24 = scalar_lea.vmem %s4559_s0, %s3268_s21  ;;  %542 = vst [vmem:[#allocation2 + $0x8] sm:$0xf] %v3815_v22  ;;  %543 = vst [vmem:[#allocation2 + $0xc] sm:$0x1] %v3815_v22  ;;  %v3709_v23 = vld [vmem:[%s4561_s2 + $0x28] sm:$0xff]   ;;  %v3710_v24 = vld [vmem:[%s4561_s2 + $0x78] sm:$0xff]   ;;  %s4539_s15 = scalar_lea.vmem %s4569_s10, %s3268_s21 }
  0x10   : > { %v361_v4 = vld [vmem:[%s3896_s24] sm:$0xff]  ;;  %v362_v5 = vld [vmem:[%s3896_s24 + $0x8] sm:$0xff]  ;;  %v363_v11 = vld [vmem:[%s3896_s24 + $0x10] sm:$0xff]  ;;  %544 = vst [vmem:[#allocation2 + $0x10] sm:$0xf] %v3815_v22  ;;  %3434 = vmatprep.subr.bf16.mxu1 %v3710_v24  ;;  %vm1173_vm9 = vcmask 1042432  }
  0x11   : > { %3413 = vmatpush3.bf16.msra.mxu0 %v3700_v1  ;;  %v369_v6 = vpack.c.bf16 %v362_v5, %v361_v4  ;;  %v364_v12 = vld [vmem:[%s3896_s24 + $0x18] sm:$0xff]  ;;  %v365_v13 = vld [vmem:[%s3896_s24 + $0x20] sm:$0xff]  ;;  %v366_v14 = vld [vmem:[%s3896_s24 + $0x28] sm:$0xff]  ;;  %545 = vst [vmem:[#allocation2 + $0x14] sm:$0x1] %v3815_v22  ;;  %3435 = vmatpush3.bf16.msra.mxu1 %v3710_v24  ;;  %vm1174_vm10 = vcmask 1046532  }
  0x12   : > { %3414 = vmatprep.subr.bf16.mxu0 %v3701_v2  ;;  %v370_v16 = vpack.c.bf16 %v364_v12, %v363_v11  ;;  %v371_v17 = vpack.c.bf16 %v366_v14, %v365_v13  ;;  %v367_v18 = vld [vmem:[%s3896_s24 + $0x30] sm:$0xff]  ;;  %v368_v19 = vld [vmem:[%s3896_s24 + $0x38] sm:$0xff]  ;;  %548 = vst [vmem:[#allocation2 + $0x20] sm:$0xf] %v3815_v22  ;;  %549 = vst [vmem:[#allocation2 + $0x24] sm:$0x1] %v3815_v22 }
  0x13   : > { %3426 = vmatprep.mubr.bf16.mxu0 %v369_v6  ;;  %v372_v20 = vpack.c.bf16 %v368_v19, %v367_v18  ;;  %550 = vst [vmem:[#allocation2 + $0x28] sm:$0xf] %v3815_v22  ;;  %551 = vst [vmem:[#allocation2 + $0x2c] sm:$0x1] %v3815_v22  ;;  %v3711_v25 = vld [vmem:[%s4561_s2 + $0x20] sm:$0xff]   ;;  %v3712_v26 = vld [vmem:[%s4561_s2 + $0x70] sm:$0xff]  }
  0x14   : > { %552 = vst [vmem:[#allocation2 + $0x30] sm:$0xf] %v3815_v22  ;;  %553 = vst [vmem:[#allocation2 + $0x34] sm:$0x1] %v3815_v22  ;;  %3436 = vmatprep.subr.bf16.mxu1 %v3712_v26  ;;  %v3713_v27 = vld [vmem:[%s4561_s2 + $0x18] sm:$0xff]   ;;  %v3714_v28 = vld [vmem:[%s4561_s2 + $0x68] sm:$0xff]  }
  0x15   : > { %3415 = vmatpush3.bf16.msra.mxu0 %v3701_v2  ;;  %554 = vst [vmem:[#allocation2 + $0x38] sm:$0xf] %v3815_v22  ;;  %555 = vst [vmem:[#allocation2 + $0x3c] sm:$0x1] %v3815_v22  ;;  %3437 = vmatpush3.bf16.msra.mxu1 %v3712_v26  ;;  %v3715_v29 = vld [vmem:[%s4561_s2 + $0x10] sm:$0xff]   ;;  %v3716_v30 = vld [vmem:[%s4561_s2 + $0x60] sm:$0xff]  }
  0x16   : > { %3416 = vmatprep.subr.bf16.mxu0 %v3702_v3  ;;  %556 = vst [vmem:[#allocation2 + $0x40] sm:$0xf] %v3815_v22  ;;  %557 = vst [vmem:[#allocation2 + $0x44] sm:$0x1] %v3815_v22  ;;  %3438 = vmatprep.subr.bf16.mxu1 %v3714_v28  ;;  %v3717_v31 = vld [vmem:[%s4561_s2 + $0x8] sm:$0xff]   ;;  %v3718_v32 = vld [vmem:[%s4561_s2 + $0x58] sm:$0xff]  }
  0x17   : > { %558 = vst [vmem:[#allocation2 + $0x48] sm:$0xf] %v3815_v22  ;;  %559 = vst [vmem:[#allocation2 + $0x4c] sm:$0x1] %v3815_v22  ;;  %v3719_v33 = vld [vmem:[%s4561_s2] sm:$0xff]   ;;  %v3720_v34 = vld [vmem:[%s4561_s2 + $0x50] sm:$0xff]  }
  0x18   : > { %v3966_v35 = vld [vmem:[%s4561_s2 + $0xf8] sm:$0xff]   ;;  %v3723_v36 = vld [vmem:[%s4561_s2 + $0x48] sm:$0xff]   ;;  %v3726_v37 = vld [vmem:[%s4561_s2 + $0x40] sm:$0xff]   ;;  %vm666_vm1 = vsmask.f32 7938 }
  0x19   : > { %3417 = vmatpush3.bf16.msra.mxu0 %v3702_v3  ;;  %3439 = vmatpush3.bf16.msra.mxu1 %v3714_v28  ;;  %v3978_v38 = vld [vmem:[%s4561_s2 + $0xb8] sm:$0xff]   ;;  %v3981_v39 = vld [vmem:[#allocation2] sm:$0xf]  ;;  %v4000_v55 = vld [vmem:[#allocation2 + $0x4] sm:$0x1] }
  0x1a   : > { %3418 = vmatprep.subr.bf16.mxu0 %v3703_v7  ;;  %3440 = vmatprep.subr.bf16.mxu1 %v3716_v30  ;;  %v3986_v40 = vld [vmem:[%s4563_s4] ss:$0 sm:$0xff]  ;;  %v755_v41 = vshrl.u32 %v3981_v39, 16  ;;  %v758_v42 = vshll.u32 %v3981_v39, 16  ;;  %v764_v58 = vshll.u32 %v4000_v55, 16  ;;  %vm4012_vm4 = vmand %vm665_vm0, %vm666_vm1 }
  0x1b   : > { %v3993_v44 = vld [vmem:[%s4564_s5] ss:$0 sm:$0xff]  ;;  %vm672_vm3 = vsmask.f32 256  ;;  %v683_v14 = vld [vmem:[#allocation2 + $0x18] sm:$0xf]  ;;  %vm4153_vm11 = vmor %vm1173_vm9, %vm1174_vm10 }
  0x1c   : > { %v757_v47 = vrot.slane %v755_v41, 4  ;;  %v760_v48 = vrot.slane %v758_v42, 5  ;;  %vm4017_vm5 = vmand %vm671_vm2, %vm672_vm3  ;;  %vm751_vm6 = vsmask.f32 3328  ;;  %vm752_vm7 = vsmask.f32 7440 }
  0x1d   : > { %3419 = vmatpush3.bf16.msra.mxu0 %v3703_v7  ;;  %3441 = vmatpush3.bf16.msra.mxu1 %v3716_v30  ;;  %v4009_v7 = vrot.slane %v764_v58, 5  ;;  %v674_v26 = vld [vmem:[#allocation2 + $0xc] sm:$0x1]  ;;  %vm4049_vm8 = vmor %vm751_vm6, %vm752_vm7 }
  0x1e   : > { %3420 = vmatprep.subr.bf16.mxu0 %v3704_v8  ;;  %3442 = vmatprep.subr.bf16.mxu1 %v3718_v32  ;;  %v761_v57 = vor.u32 %v760_v48, %v757_v47  ;;  %v689_v47 = vld [vmem:[#allocation2 + $0x20] sm:$0xf]  ;;  %v692_v48 = vld [vmem:[#allocation2 + $0x24] sm:$0x1] }
  0x20   : > { %v4007_v6 = vrot.slane %v761_v57, 4  ;;  %v680_v57 = vld [vmem:[#allocation2 + $0x14] sm:$0x1] }
  0x21   : > { %3421 = vmatpush3.bf16.msra.mxu0 %v3704_v8  ;;  %3443 = vmatpush3.bf16.msra.mxu1 %v3718_v32 }
  0x22   : > { %3422 = vmatprep.subr.bf16.mxu0 %v3705_v9  ;;  %3444 = vmatprep.subr.bf16.mxu1 %v3720_v34 }
  0x25   : > { %3423 = vmatpush3.bf16.msra.mxu0 %v3705_v9  ;;  %3445 = vmatpush3.bf16.msra.mxu1 %v3720_v34 }
  0x26   : > { %3424 = vmatprep.subr.bf16.mxu0 %v3706_v10  ;;  %3446 = vmatprep.subr.bf16.mxu1 %v3723_v36 }
  0x29   : > { %3425 = vmatpush3.bf16.msra.mxu0 %v3706_v10  ;;  %3447 = vmatpush3.bf16.msra.mxu1 %v3723_v36  ;;  %v3728_v10 = vld [vmem:[%s4561_s2 + $0xe8] sm:$0xff]  }
  0x2a   : > { %3458 = vmatprep.subr.bf16.mxu0 %v3707_v15  ;;  %3448 = vmatprep.subr.bf16.mxu1 %v3726_v37 }
  0x2c   : > { %3427 = vmatmul.mubr.bf16.vlgmr.msra.gmra.mxu0 %v370_v16 }
  0x2d   : > { %3430 = vmatprep.mubr.bf16.mxu0 %v371_v17  ;;  %3459 = vmatpush3.bf16.msra.mxu0 %v3707_v15  ;;  %v686_v15 = vld [vmem:[#allocation2 + $0x1c] sm:$0x1] }
  0x2e   : > { %3460 = vmatprep.subr.bf16.mxu0 %v3708_v21  ;;  %3449 = vmatpush3.bf16.msra.mxu1 %v3726_v37 }
  0x2f   : > { %3482 = vmatprep.subr.bf16.mxu1 %v3978_v38 }
  0x31   : > { %3461 = vmatpush3.bf16.msra.mxu0 %v3708_v21 }
  0x32   : > { %3462 = vmatprep.subr.bf16.mxu0 %v3709_v23 }
  0x34   : > { %3431 = vmatmul.mubr.bf16.gmra.mxu0 %v372_v20 }
  0x35   : > { %3463 = vmatpush3.bf16.msra.mxu0 %v3709_v23 }
  0x36   : > { %3464 = vmatprep.subr.bf16.mxu0 %v3711_v25 }
  0x39   : > { %3465 = vmatpush3.bf16.msra.mxu0 %v3711_v25  ;;  %v668_v25 = vld [vmem:[#allocation2 + $0x8] sm:$0xf] }
  0x3a   : > { %3466 = vmatprep.subr.bf16.mxu0 %v3713_v27 }
  0x3d   : > { %3467 = vmatpush3.bf16.msra.mxu0 %v3713_v27 }
  0x3e   : > { %3468 = vmatprep.subr.bf16.mxu0 %v3715_v29 }
  0x41   : > { %3469 = vmatpush3.bf16.msra.mxu0 %v3715_v29 }
  0x42   : > { %3470 = vmatprep.subr.bf16.mxu0 %v3717_v31 }
  0x45   : > { %3471 = vmatpush3.bf16.msra.mxu0 %v3717_v31 }
  0x46   : > { %3472 = vmatprep.subr.bf16.mxu0 %v3719_v33 }
  0x49   : > { %3473 = vmatpush3.bf16.msra.mxu0 %v3719_v33 }
  0x4a   : > { %3506 = vmatprep.subr.bf16.mxu0 %v3966_v35 }
  0xec   : > { %v3428_v43 = vpop.f32.mrf.mxu0 }
  0xed   : > { %v511_v45 = vmul.f32 %v3428_v43, %v3986_v40 }
  0xee   : > { %v471_v46 = vpop.f32.mrf.mxu0 }
  0xef   : > { %v526_v49 = vadd.f32 %v3993_v44, %v511_v45  ;;  %v509_v50 = vmul.f32 %v3986_v40, %v471_v46 }
  0xf0   : > { %v3429_v51 = vpop.f32.mrf.mxu0 }
  0xf1   : > { %v534_v52 = vmax.f32 %v526_v49, 0.0  ;;  %v524_v53 = vadd.f32 %v3993_v44, %v509_v50  ;;  %v512_v54 = vmul.f32 %v3429_v51, %v3986_v40 }
  0xf2   : > { %v474_v56 = vpop.f32.mrf.mxu0 }
  0xf3   : > { %v3272_v59 = vpack.c.bf16 %v534_v52, %v534_v52  ;;  %v532_v60 = vmax.f32 %v524_v53, 0.0  ;;  %v527_v61 = vadd.f32 %v3993_v44, %v512_v54  ;;  %v510_v62 = vmul.f32 %v3986_v40, %v474_v56  ;;  %v677_v56 = vld [vmem:[#allocation2 + $0x10] sm:$0xf] }
  0xf4   : > { %v3432_v63 = vpop.f32.mrf.mxu0 }
  0xf5   : > { %v601_v0 = vshrl.u32 %v3272_v59, 16  ;;  %v3270_v1 = vpack.c.bf16 %v532_v60, %v532_v60  ;;  %v535_v2 = vmax.f32 %v527_v61, 0.0  ;;  %v525_v3 = vadd.f32 %v3993_v44, %v510_v62 }
  0xf6   : > { %v515_v4 = vmul.f32 %v3432_v63, %v3986_v40  ;;  %v487_v5 = vpop.f32.mrf.mxu0  ;;  %v604_v9 = vshll.u32 %v3272_v59, 16 }
  0xf7   : > { %v603_v8 = vrot.slane %v601_v0, 7  ;;  %v585_v11 = vshrl.u32 %v3270_v1, 16  ;;  %v3273_v12 = vpack.c.bf16 %v535_v2, %v535_v2  ;;  %v588_v16 = vshll.u32 %v3270_v1, 16 }
  0xf8   : > { %v533_v17 = vmax.f32 %v525_v3, 0.0  ;;  %v530_v18 = vadd.f32 %v3993_v44, %v515_v4  ;;  %v513_v19 = vmul.f32 %v3986_v40, %v487_v5  ;;  %v3433_v20 = vpop.f32.mrf.mxu0  ;;  %v707_v3 = vld [vmem:[#allocation2 + $0x38] sm:$0xf] }
  0xf9   : > { %v606_v21 = vor.u32 %v604_v9, %v603_v8  ;;  %v607_v22 = vrot.slane %v603_v8, 4  ;;  %v587_v23 = vrot.slane %v585_v11, 7  ;;  %v609_v24 = vshrl.u32 %v3273_v12, 16  ;;  %v710_v11 = vld [vmem:[#allocation2 + $0x3c] sm:$0x1] }
  0xfa   : > { %v612_v27 = vshll.u32 %v3273_v12, 16  ;;  %v3271_v28 = vpack.c.bf16 %v533_v17, %v533_v17  ;;  %v538_v29 = vmax.f32 %v530_v18, 0.0  ;;  %v528_v30 = vadd.f32 %v3993_v44, %v513_v19  ;;  %v490_v43 = vpop.f32.mrf.mxu0  ;;  %v695_v12 = vld [vmem:[#allocation2 + $0x28] sm:$0xf]  ;;  %v698_v19 = vld [vmem:[#allocation2 + $0x2c] sm:$0x1] }
  0xfb   : > { %v684_v31 = vsel %vm4012_vm4, %v606_v21, %v683_v14  ;;  %v687_v32 = vsel %vm4017_vm5, %v607_v22, %v686_v15  ;;  %v590_v33 = vor.u32 %v588_v16, %v587_v23  ;;  %v591_v34 = vrot.slane %v587_v23, 4  ;;  %v3783_v22 = vld [vmem:[%s4561_s2 + $0x230] sm:$0xff]  }
  0xfc   : > { %685 = vst [vmem:[#allocation2 + $0x18] sm:$0xf] %v684_v31  ;;  %688 = vst [vmem:[#allocation2 + $0x1c] sm:$0x1] %v687_v32  ;;  %v611_v36 = vrot.slane %v609_v24, 7  ;;  %v593_v37 = vshrl.u32 %v3271_v28, 16  ;;  %v3276_v42 = vpack.c.bf16 %v538_v29, %v538_v29  ;;  %v516_v50 = vmul.f32 %v3433_v20, %v3986_v40 }
  0xfd   : > { %v596_v41 = vshll.u32 %v3271_v28, 16  ;;  %v669_v45 = vsel %vm4012_vm4, %v590_v33, %v668_v25  ;;  %v675_v46 = vsel %vm4017_vm5, %v591_v34, %v674_v26  ;;  %v536_v49 = vmax.f32 %v528_v30, 0.0 }
  0xfe   : > { %670 = vst [vmem:[#allocation2 + $0x8] sm:$0xf] %v669_v45  ;;  %676 = vst [vmem:[#allocation2 + $0xc] sm:$0x1] %v675_v46  ;;  %v614_v51 = vor.u32 %v612_v27, %v611_v36  ;;  %v615_v52 = vrot.slane %v611_v36, 4  ;;  %v595_v53 = vrot.slane %v593_v37, 7  ;;  %v531_v60 = vadd.f32 %v3993_v44, %v516_v50 }
  0xff   : > { %v633_v54 = vshrl.u32 %v3276_v42, 16  ;;  %v636_v58 = vshll.u32 %v3276_v42, 16  ;;  %v3274_v59 = vpack.c.bf16 %v536_v49, %v536_v49  ;;  %v514_v61 = vmul.f32 %v3986_v40, %v490_v43  ;;  %v713_v42 = vld [vmem:[#allocation2 + $0x40] sm:$0xf]  ;;  %v716_v43 = vld [vmem:[#allocation2 + $0x44] sm:$0x1] }
 0x100   : > { %v690_v62 = vsel %vm4012_vm4, %v614_v51, %v689_v47  ;;  %v693_v63 = vsel %vm4017_vm5, %v615_v52, %v692_v48  ;;  %v598_v0 = vor.u32 %v596_v41, %v595_v53  ;;  %v599_v1 = vrot.slane %v595_v53, 4  ;;  %v701_v52 = vld [vmem:[#allocation2 + $0x30] sm:$0xf]  ;;  %v704_v53 = vld [vmem:[#allocation2 + $0x34] sm:$0x1] }
 0x101   : > { %691 = vst [vmem:[#allocation2 + $0x20] sm:$0xf] %v690_v62  ;;  %694 = vst [vmem:[#allocation2 + $0x24] sm:$0x1] %v693_v63  ;;  %v635_v2 = vrot.slane %v633_v54, 7  ;;  %v617_v4 = vshrl.u32 %v3274_v59, 16  ;;  %v529_v14 = vadd.f32 %v3993_v44, %v514_v61  ;;  %v767_v44 = vsel %vm4049_vm8, %v4007_v6, %v4009_v7 }
 0x102   : > { %v620_v5 = vshll.u32 %v3274_v59, 16  ;;  %v539_v8 = vmax.f32 %v531_v60, 0.0  ;;  %v678_v9 = vsel %vm4012_vm4, %v598_v0, %v677_v56  ;;  %v681_v40 = vsel %vm4017_vm5, %v599_v1, %v680_v57  ;;  %v3725_v1 = vld [vmem:[%s4561_s2 + $0xf0] sm:$0xff]  }
 0x103   : > { %v1178_v15 = vrot.slane %v4000_v55, 5  ;;  %679 = vst [vmem:[#allocation2 + $0x10] sm:$0xf] %v678_v9  ;;  %682 = vst [vmem:[#allocation2 + $0x14] sm:$0x1] %v681_v40  ;;  %v638_v16 = vor.u32 %v636_v58, %v635_v2  ;;  %v639_v17 = vrot.slane %v635_v2, 4 }
 0x104   : > { %v619_v18 = vrot.slane %v617_v4, 7  ;;  %v3277_v20 = vpack.c.bf16 %v539_v8, %v539_v8  ;;  %v4045_v21 = vld [vmem:[#allocation2 + $0x18] sm:$0xf]  ;;  %v537_v23 = vmax.f32 %v529_v14, 0.0  ;;  %v4070_v47 = vld [vmem:[#allocation2 + $0x1c] sm:$0x1] }
 0x105   : > { %v797_v24 = vshrl.u32 %v4045_v21, 16  ;;  %v800_v25 = vshll.u32 %v4045_v21, 16  ;;  %v708_v26 = vsel %vm4012_vm4, %v638_v16, %v707_v3  ;;  %v711_v27 = vsel %vm4017_vm5, %v639_v17, %v710_v11  ;;  %v720_v30 = vld [vmem:[#allocation2 + $0x8] sm:$0xf]  ;;  %v4063_v31 = vld [vmem:[#allocation2 + $0xc] sm:$0x1] }
 0x106   : > { %v622_v28 = vor.u32 %v620_v5, %v619_v18  ;;  %v623_v29 = vrot.slane %v619_v18, 4  ;;  %709 = vst [vmem:[#allocation2 + $0x38] sm:$0xf] %v708_v26  ;;  %712 = vst [vmem:[#allocation2 + $0x3c] sm:$0x1] %v711_v27  ;;  %v641_v32 = vshrl.u32 %v3277_v20, 16  ;;  %v3275_v34 = vpack.c.bf16 %v537_v23, %v537_v23 }
 0x107   : > { %v644_v33 = vshll.u32 %v3277_v20, 16  ;;  %v3022_v36 = vcombine.low %v3981_v39, %v720_v30  ;;  %v769_v45 = vshrl.u32 %v720_v30, 16  ;;  %v772_v46 = vshll.u32 %v720_v30, 16  ;;  %v3740_v55 = vld [vmem:[%s4561_s2 + $0xc0] sm:$0xff]  }
 0x108   : > { %v696_v37 = vsel %vm4012_vm4, %v622_v28, %v695_v12  ;;  %v699_v41 = vsel %vm4017_vm5, %v623_v29, %v698_v19  ;;  %v643_v48 = vrot.slane %v641_v32, 7  ;;  %v625_v49 = vshrl.u32 %v3275_v34, 16  ;;  %v723_v51 = vld [vmem:[#allocation2 + $0x20] sm:$0xf] }
 0x109   : > { %697 = vst [vmem:[#allocation2 + $0x28] sm:$0xf] %v696_v37  ;;  %700 = vst [vmem:[#allocation2 + $0x2c] sm:$0x1] %v699_v41  ;;  %v628_v50 = vshll.u32 %v3275_v34, 16  ;;  %3474 = vmatprep.mubr.bf16.mxu0 %v3022_v36  ;;  %v778_v39 = vshll.u32 %v4063_v31, 16 }
 0x10a   : > { %v811_v54 = vshrl.u32 %v723_v51, 16  ;;  %v814_v56 = vshll.u32 %v723_v51, 16  ;;  %v771_v57 = vrot.slane %v769_v45, 4  ;;  %v774_v58 = vrot.slane %v772_v46, 5  ;;  %v721_v62 = vld [vmem:[#allocation2 + $0x10] sm:$0xf] }
 0x10b   : > { %v646_v59 = vor.u32 %v644_v33, %v643_v48  ;;  %v647_v60 = vrot.slane %v643_v48, 4  ;;  %v627_v61 = vrot.slane %v625_v49, 7  ;;  %v806_v63 = vshll.u32 %v4070_v47, 16  ;;  %v4084_v11 = vld [vmem:[#allocation2 + $0x14] sm:$0x1] }
 0x10c   : > { %v3023_v0 = vcombine.low %v721_v62, %v4045_v21  ;;  %v4078_v2 = vrot.slane %v811_v54, 4  ;;  %v775_v3 = vor.u32 %v774_v58, %v771_v57  ;;  %v780_v4 = vrot.slane %v778_v39, 5  ;;  %v1149_v57 = vld [vmem:[#allocation2] sm:$0xe] }
 0x10d   : > { %v714_v5 = vsel %vm4012_vm4, %v646_v59, %v713_v42  ;;  %v717_v8 = vsel %vm4017_vm5, %v647_v60, %v716_v43  ;;  %v630_v9 = vor.u32 %v628_v50, %v627_v61  ;;  %v631_v40 = vrot.slane %v627_v61, 4  ;;  %v4086_v16 = vld [vmem:[#allocation2 + $0x38] sm:$0xf]  ;;  %v4106_v42 = vld [vmem:[#allocation2 + $0x24] sm:$0x1] }
 0x10e   : > { %715 = vst [vmem:[#allocation2 + $0x40] sm:$0xf] %v714_v5  ;;  %718 = vst [vmem:[#allocation2 + $0x44] sm:$0x1] %v717_v8  ;;  %3475 = vmatmul.mubr.bf16.vlgmr.msra.gmra.mxu0 %v3023_v0  ;;  %v816_v12 = vrot.slane %v814_v56, 5  ;;  %v776_v14 = vrot.slane %v775_v3, 4 }
 0x10f   : > { %v783_v17 = vshrl.u32 %v721_v62, 16  ;;  %v786_v18 = vshll.u32 %v721_v62, 16  ;;  %v702_v19 = vsel %vm4012_vm4, %v630_v9, %v701_v52  ;;  %v705_v20 = vsel %vm4017_vm5, %v631_v40, %v704_v53  ;;  %3507 = vmatpush3.bf16.msra.mxu0 %v3966_v35  ;;  %v4112_v49 = vld [vmem:[#allocation2 + $0x3c] sm:$0x1]  ;;  %v3732_v50 = vld [vmem:[%s4561_s2 + $0xe0] sm:$0xff]  }
 0x110   : > { %v853_v23 = vshrl.u32 %v4086_v16, 16  ;;  %v856_v26 = vshll.u32 %v4086_v16, 16  ;;  %703 = vst [vmem:[#allocation2 + $0x30] sm:$0xf] %v702_v19  ;;  %706 = vst [vmem:[#allocation2 + $0x34] sm:$0x1] %v705_v20  ;;  %3508 = vmatprep.subr.bf16.mxu0 %v3725_v1  ;;  %v781_v28 = vsel %vm4049_vm8, %v776_v14, %v780_v4 }
 0x111   : > { %v724_v27 = vld [vmem:[#allocation2 + $0x28] sm:$0xf]  ;;  %v785_v29 = vrot.slane %v783_v17, 4  ;;  %v788_v13 = vrot.slane %v786_v18, 5  ;;  %v792_v30 = vshll.u32 %v4084_v11, 16  ;;  %v3010_v34 = vcombine.low %v767_v44, %v781_v28  ;;  %v3734_v4 = vld [vmem:[%s4561_s2 + $0xd8] sm:$0xff]  }
 0x112   : > { %v825_v35 = vshrl.u32 %v724_v27, 16  ;;  %v828_v32 = vshll.u32 %v724_v27, 16  ;;  %v3024_v33 = vcombine.low %v723_v51, %v724_v27  ;;  %v855_v36 = vrot.slane %v853_v23, 4  ;;  %v4117_v39 = vld [vmem:[#allocation2 + $0x2c] sm:$0x1]  ;;  %v3733_v19 = vld [vmem:[%s4561_s2 + $0xb0] sm:$0xff]  }
 0x113   : > { %v858_v37 = vrot.slane %v856_v26, 5  ;;  %v789_v41 = vor.u32 %v788_v13, %v785_v29  ;;  %3509 = vmatpush3.bf16.msra.mxu0 %v3725_v1  ;;  %v799_v46 = vrot.slane %v797_v24, 4  ;;  %v802_v48 = vrot.slane %v800_v25, 5  ;;  %3450 = vmatprep.mubr.bf16.mxu1 %v3010_v34  ;;  %v3731_v9 = vld [vmem:[#allocation2 + $0x8] ss:$8 sps:$4 sm:$0xff]  }
 0x114   : > { %v827_v43 = vrot.slane %v825_v35, 4  ;;  %v830_v45 = vrot.slane %v828_v32, 5  ;;  %3478 = vmatprep.mubr.bf16.mxu0 %v3024_v33  ;;  %3510 = vmatprep.subr.bf16.mxu0 %v3728_v10  ;;  %v794_v7 = vrot.slane %v792_v30, 5  ;;  %v808_v44 = vrot.slane %v806_v63, 5  ;;  %v1150_v63 = vld [vmem:[#allocation2 + $0x8] sm:$0xe] }
 0x115   : > { %v790_v6 = vrot.slane %v789_v41, 4  ;;  %v803_v51 = vor.u32 %v802_v48, %v799_v46  ;;  %v817_v24 = vor.u32 %v816_v12, %v4078_v2  ;;  %v820_v21 = vshll.u32 %v4106_v42, 16  ;;  %v3736_v30 = vld [vmem:[%s4561_s2 + $0xd0] sm:$0xff]   ;;  %v3735_v35 = vld [vmem:[%s4561_s2 + $0xa8] sm:$0xff]   ;;  %v3743_v46 = vld [vmem:[%s4561_s2 + $0x178] sm:$0xff]  }
 0x116   : > { %v831_v25 = vor.u32 %v830_v45, %v827_v43  ;;  %v834_v53 = vshll.u32 %v4117_v39, 16  ;;  %v859_v54 = vor.u32 %v858_v37, %v855_v36  ;;  %v862_v56 = vshll.u32 %v4112_v49, 16  ;;  %v3738_v37 = vld [vmem:[%s4561_s2 + $0xc8] sm:$0xff]   ;;  %v3737_v43 = vld [vmem:[%s4561_s2 + $0xa0] sm:$0xff]   ;;  %v3741_v48 = vld [vmem:[%s4561_s2 + $0x90] sm:$0xff]  }
 0x117   : > { %v795_v52 = vsel %vm4049_vm8, %v790_v6, %v794_v7  ;;  %v725_v58 = vld [vmem:[#allocation2 + $0x30] sm:$0xf]  ;;  %3511 = vmatpush3.bf16.msra.mxu0 %v3728_v10  ;;  %v804_v59 = vrot.slane %v803_v51, 4  ;;  %v818_v60 = vrot.slane %v817_v24, 4  ;;  %v822_v61 = vrot.slane %v820_v21, 5  ;;  %v3793_v33 = vld [vmem:[%s4562_s3 + $0x28] sm:$0xff]  }
 0x118   : > { %v832_v62 = vrot.slane %v831_v25, 4  ;;  %v839_v0 = vshrl.u32 %v725_v58, 16  ;;  %v842_v1 = vshll.u32 %v725_v58, 16  ;;  %v3025_v2 = vcombine.low %v725_v58, %v4086_v16  ;;  %3512 = vmatprep.subr.bf16.mxu0 %v3732_v50  ;;  %v4129_v5 = vld [vmem:[#allocation2 + $0x34] sm:$0x1] }
 0x119   : > { %v836_v3 = vrot.slane %v834_v53, 5  ;;  %v809_v8 = vsel %vm4049_vm8, %v804_v59, %v808_v44  ;;  %v823_v40 = vsel %vm4049_vm8, %v818_v60, %v822_v61  ;;  %v848_v12 = vshll.u32 %v4129_v5, 16  ;;  %v3746_v6 = vld [vmem:[%s4561_s2 + $0x170] sm:$0xff]   ;;  %v4186_v7 = vld [vmem:[#allocation2 + $0xc] sm:$0x1] }
 0x11a   : > { %v860_v14 = vrot.slane %v859_v54, 4  ;;  %v841_v17 = vrot.slane %v839_v0, 4  ;;  %v844_v16 = vrot.slane %v842_v1, 5  ;;  %3479 = vmatmul.mubr.bf16.gmra.mxu0 %v3025_v2  ;;  %v3011_v18 = vcombine.low %v795_v52, %v809_v8  ;;  %v3742_v44 = vld [vmem:[#allocation2 + $0x18] ss:$8 sps:$4 sm:$0xff]   ;;  %v3744_v52 = vld [vmem:[%s4561_s2 + $0x88] sm:$0xff]  }
 0x11b   : > { %v837_v20 = vsel %vm4049_vm8, %v832_v62, %v836_v3  ;;  %3522 = vmatprep.mubr.bf16.mxu0 %v3731_v9  ;;  %3513 = vmatpush3.bf16.msra.mxu0 %v3732_v50  ;;  %v864_v26 = vrot.slane %v862_v56, 5  ;;  %v3034_v27 = vrot.slane %v1149_v57, 9  ;;  %v1182_v28 = vrot.slane %v4063_v31, 5  ;;  %v4188_v50 = vld [vmem:[#allocation2 + $0x14] sm:$0x1]  ;;  %v3749_v60 = vld [vmem:[%s4561_s2 + $0x168] sm:$0xff]  }
 0x11c   : > { %v3012_v23 = vcombine.low %v823_v40, %v837_v20  ;;  %3451 = vmatmul.mubr.bf16.vlgmr.msra.gmra.mxu1 %v3011_v18  ;;  %3514 = vmatprep.subr.bf16.mxu0 %v3734_v4  ;;  %v845_v10 = vor.u32 %v844_v16, %v841_v17  ;;  %v850_v29 = vrot.slane %v848_v12, 5  ;;  %v3035_v13 = vrot.slane %v1150_v63, 9  ;;  %v1815_v51 = vld [vmem:[#allocation2 + $0x10] sm:$0xe]  ;;  %v1814_v24 = vld [vmem:[#allocation2 + $0x8] sm:$0xe] }
 0x11d   : > { %3483 = vmatpush3.bf16.msra.mxu1 %v3978_v38  ;;  %v865_v31 = vsel %vm4049_vm8, %v860_v14, %v864_v26  ;;  %v1179_v34 = vsel %vm4153_vm11, %v3034_v27, %v1178_v15  ;;  %v3739_v15 = vld [vmem:[%s4561_s2 + $0x98] sm:$0xff]   ;;  %v3745_v21 = vld [vmem:[#allocation2 + $0x28] ss:$8 sps:$4 sm:$0xff]   ;;  %v3127_v53 = vrot.slane %v1815_v51, 9  ;;  %v1844_v54 = vrot.slane %v4188_v50, 5 }
 0x11e   : > { %3454 = vmatprep.mubr.bf16.mxu1 %v3012_v23  ;;  %3484 = vmatprep.subr.bf16.mxu1 %v3733_v19  ;;  %v846_v32 = vrot.slane %v845_v10, 4  ;;  %v1183_v36 = vsel %vm4153_vm11, %v3035_v13, %v1182_v28  ;;  %v1534_v25 = vld [vmem:[#allocation2 + $0x10] sm:$0xf]  ;;  %v1532_v56 = vld [vmem:[#allocation2 + $0x8] sm:$0xf]  ;;  %v3126_v58 = vrot.slane %v1814_v24, 9 }
 0x11f   : > { %3515 = vmatpush3.bf16.msra.mxu0 %v3734_v4  ;;  %v3058_v45 = vcombine.low %v1179_v34, %v1183_v36  ;;  %v1151_v57 = vld [vmem:[#allocation2 + $0x10] sm:$0xe]  ;;  %v1840_v59 = vrot.slane %v4186_v7, 5  ;;  %v1152_v61 = vld [vmem:[#allocation2 + $0x18] sm:$0xe]  ;;  %v1563_v62 = vshrl.u32 %v1534_v25, 16  ;;  %v1845_v9 = vsel %vm4153_vm11, %v3127_v53, %v1844_v54 }
 0x120   : > { %v851_v38 = vsel %vm4049_vm8, %v846_v32, %v850_v29  ;;  %3516 = vmatprep.subr.bf16.mxu0 %v3736_v30  ;;  %v1566_v63 = vshll.u32 %v1534_v25, 16  ;;  %v1154_v0 = vld [vmem:[#allocation2 + $0x28] sm:$0xe]  ;;  %v1549_v1 = vshrl.u32 %v1532_v56, 16  ;;  %v1552_v2 = vshll.u32 %v1532_v56, 16  ;;  %v3747_v4 = vld [vmem:[%s4561_s2 + $0x80] sm:$0xff]  }
 0x121   : > { %3485 = vmatpush3.bf16.msra.mxu1 %v3733_v19  ;;  %v3013_v41 = vcombine.low %v851_v38, %v865_v31  ;;  %v1186_v3 = vrot.slane %v4084_v11, 5  ;;  %v3036_v8 = vrot.slane %v1151_v57, 9  ;;  %v1190_v40 = vrot.slane %v4070_v47, 5  ;;  %v1153_v17 = vld [vmem:[#allocation2 + $0x20] sm:$0xe]  ;;  %v3750_v47 = vld [vmem:[%s4561_s2 + $0x138] sm:$0xff]  }
 0x122   : > { %3486 = vmatprep.subr.bf16.mxu1 %v3735_v35  ;;  %v3037_v12 = vrot.slane %v1152_v61, 9  ;;  %v1841_v14 = vsel %vm4153_vm11, %v3126_v58, %v1840_v59  ;;  %v3751_v11 = vld [vmem:[%s4561_s2 + $0x160] sm:$0xff]   ;;  %v3039_v18 = vrot.slane %v1154_v0, 9  ;;  %v1198_v19 = vrot.slane %v4117_v39, 5  ;;  %v1156_v39 = vld [vmem:[#allocation2 + $0x38] sm:$0xe] }
 0x123   : > { %3517 = vmatpush3.bf16.msra.mxu0 %v3736_v30  ;;  %v3748_v16 = vld [vmem:[#allocation2 + $0x38] ss:$8 sps:$4 sm:$0xff]   ;;  %v1565_v20 = vrot.slane %v1563_v62, 4  ;;  %v1568_v23 = vrot.slane %v1566_v63, 5  ;;  %v3150_v26 = vcombine.low %v1841_v14, %v1845_v9  ;;  %v1551_v27 = vrot.slane %v1549_v1, 4  ;;  %v3754_v25 = vld [vmem:[%s4561_s2 + $0x128] sm:$0xff]  }
 0x124   : > { %3455 = vmatmul.mubr.bf16.gmra.mxu1 %v3013_v41  ;;  %3518 = vmatprep.subr.bf16.mxu0 %v3738_v37  ;;  %v1554_v28 = vrot.slane %v1552_v2, 5  ;;  %v1187_v10 = vsel %vm4153_vm11, %v3036_v8, %v1186_v3  ;;  %v3038_v29 = vrot.slane %v1153_v17, 9  ;;  %v1194_v13 = vrot.slane %v4106_v42, 5  ;;  %v1155_v30 = vld [vmem:[#allocation2 + $0x30] sm:$0xe]  ;;  %v3753_v31 = vld [vmem:[%s4561_s2 + $0x158] sm:$0xff]  }
 0x125   : > { %3487 = vmatpush3.bf16.msra.mxu1 %v3735_v35  ;;  %3498 = vmatprep.mubr.bf16.mxu1 %v3058_v45  ;;  %v1191_v35 = vsel %vm4153_vm11, %v3037_v12, %v1190_v40  ;;  %v1199_v32 = vsel %vm4153_vm11, %v3039_v18, %v1198_v19  ;;  %v1569_v38 = vor.u32 %v1568_v23, %v1565_v20  ;;  %v3040_v36 = vrot.slane %v1155_v30, 9  ;;  %v1817_v51 = vld [vmem:[#allocation2 + $0x20] sm:$0xe]  ;;  %v4247_v53 = vld [vmem:[#allocation2 + $0x18] sm:$0xe]  ;;  %v3757_v62 = vld [vmem:[%s4561_s2 + $0x148] sm:$0xff]  }
 0x126   : > { %3488 = vmatprep.subr.bf16.mxu1 %v3737_v43  ;;  %v3059_v34 = vcombine.low %v1187_v10, %v1191_v35  ;;  %v1202_v42 = vrot.slane %v4129_v5, 5  ;;  %v1195_v41 = vsel %vm4153_vm11, %v3038_v29, %v1194_v13  ;;  %v3041_v45 = vrot.slane %v1156_v39, 9  ;;  %v4249_v54 = vld [vmem:[#allocation2 + $0x34] sm:$0x1]  ;;  %v2195_v58 = vld [vmem:[#allocation2 + $0x10] sm:$0xf] }
 0x127   : > { %3519 = vmatpush3.bf16.msra.mxu0 %v3738_v37  ;;  %v1555_v37 = vor.u32 %v1554_v28, %v1551_v27  ;;  %v1570_v5 = vrot.slane %v1569_v38, 4  ;;  %v3129_v57 = vrot.slane %v1817_v51, 9  ;;  %v2197_v59 = vld [vmem:[#allocation2 + $0x18] sm:$0xf]  ;;  %v3756_v61 = vld [vmem:[%s4561_s2 + $0x120] sm:$0xff]   ;;  %v2212_v17 = vshrl.u32 %v2195_v58, 16 }
 0x128   : > { %3520 = vmatprep.subr.bf16.mxu0 %v3740_v55  ;;  %v1819_v0 = vld [vmem:[#allocation2 + $0x30] sm:$0xe]  ;;  %v4263_v8 = vld [vmem:[#allocation2 + $0x1c] sm:$0x1]  ;;  %v4265_v9 = vld [vmem:[#allocation2 + $0x38] sm:$0xe] }
 0x129   : > { %3489 = vmatpush3.bf16.msra.mxu1 %v3737_v43  ;;  %v3752_v43 = vld [vmem:[%s4561_s2 + $0x130] sm:$0xff]   ;;  %v1556_v24 = vrot.slane %v1555_v37, 4  ;;  %v1536_v40 = vld [vmem:[#allocation2 + $0x18] sm:$0xf]  ;;  %v4267_v12 = vld [vmem:[#allocation2 + $0x3c] sm:$0x1] }
 0x12a   : > { %3490 = vmatprep.subr.bf16.mxu1 %v3739_v15  ;;  %v1538_v14 = vld [vmem:[#allocation2 + $0x20] sm:$0xf]  ;;  %v2229_v18 = vshll.u32 %v2197_v59, 16  ;;  %v3128_v23 = vrot.slane %v4247_v53, 9  ;;  %v4274_v27 = vld [vmem:[#allocation2 + $0x44] sm:$0x1] }
 0x12b   : > { %3521 = vmatpush3.bf16.msra.mxu0 %v3740_v55  ;;  %v1206_v55 = vrot.slane %v4112_v49, 5  ;;  %v4238_v49 = vld [vmem:[#allocation2 + $0x2c] sm:$0x1]  ;;  %v3759_v20 = vld [vmem:[%s4561_s2 + $0x140] sm:$0xff]   ;;  %v1848_v28 = vrot.slane %v4263_v8, 5  ;;  %v3132_v30 = vrot.slane %v4265_v9, 9 }
 0x12c   : > { %3554 = vmatprep.subr.bf16.mxu0 %v3743_v46  ;;  %v1856_v2 = vrot.slane %v4238_v49, 5  ;;  %v1821_v13 = vld [vmem:[#allocation2 + $0x40] sm:$0xe]  ;;  %v1540_v39 = vld [vmem:[#allocation2 + $0x28] sm:$0xf]  ;;  %v1577_v35 = vshrl.u32 %v1536_v40, 16 }
 0x12d   : > { %3491 = vmatpush3.bf16.msra.mxu1 %v3739_v15  ;;  %v1572_v15 = vshll.u32 %v4188_v50, 16  ;;  %v1818_v50 = vld [vmem:[#allocation2 + $0x28] sm:$0xe]  ;;  %v1594_v38 = vshll.u32 %v1538_v14, 16  ;;  %v1605_v51 = vshrl.u32 %v1540_v39, 16 }
 0x12e   : > { %3492 = vmatprep.subr.bf16.mxu1 %v3741_v48  ;;  %3523 = vmatmul.mubr.bf16.vlgmr.msra.gmra.mxu0 %v3742_v44  ;;  %v4236_v44 = vld [vmem:[#allocation2 + $0x24] sm:$0x1]  ;;  %v3130_v1 = vrot.slane %v1818_v50, 9 }
 0x12f   : > { %3526 = vmatprep.mubr.bf16.mxu0 %v3745_v21  ;;  %3555 = vmatpush3.bf16.msra.mxu0 %v3743_v46  ;;  %v3060_v46 = vcombine.low %v1195_v41, %v1199_v32  ;;  %v1207_v21 = vsel %vm4153_vm11, %v3041_v45, %v1206_v55  ;;  %v1852_v63 = vrot.slane %v4236_v44, 5  ;;  %v1580_v32 = vshll.u32 %v1536_v40, 16  ;;  %v3761_v45 = vld [vmem:[%s4561_s2 + $0x1f8] sm:$0xff]  }
 0x130   : > { %3556 = vmatprep.subr.bf16.mxu0 %v3746_v6  ;;  %v4281_v29 = vsel %vm4153_vm11, %v3130_v1, %v1856_v2  ;;  %v1596_v53 = vrot.slane %v1594_v38, 5  ;;  %v1544_v2 = vld [vmem:[#allocation2 + $0x38] sm:$0xf] }
 0x131   : > { %3493 = vmatpush3.bf16.msra.mxu1 %v3741_v48  ;;  %v1558_v48 = vshll.u32 %v4186_v7, 16  ;;  %v1203_v7 = vsel %vm4153_vm11, %v3040_v36, %v1202_v42  ;;  %v1853_v10 = vsel %vm4153_vm11, %v3129_v57, %v1852_v63  ;;  %v3758_v36 = vld [vmem:[%s4561_s2 + $0x118] sm:$0xff]   ;;  %v2214_v42 = vrot.slane %v2212_v17, 4  ;;  %v3763_v63 = vld [vmem:[%s4561_s2 + $0x1f0] sm:$0xff]  }
 0x132   : > { %3494 = vmatprep.subr.bf16.mxu1 %v3744_v52  ;;  %v3061_v3 = vcombine.low %v1203_v7, %v1207_v21  ;;  %v1579_v21 = vrot.slane %v1577_v35, 4  ;;  %v1849_v57 = vsel %vm4153_vm11, %v3128_v23, %v1848_v28  ;;  %v1633_v28 = vshrl.u32 %v1544_v2, 16 }
 0x133   : > { %3557 = vmatpush3.bf16.msra.mxu0 %v3746_v6  ;;  %v3755_v6 = vld [vmem:[%s4561_s2 + $0x150] sm:$0xff]   ;;  %v1560_v56 = vrot.slane %v1558_v48, 5  ;;  %v1868_v48 = vrot.slane %v4274_v27, 5 }
 0x134   : > { %3558 = vmatprep.subr.bf16.mxu0 %v3749_v60 }
 0x135   : > { %3495 = vmatpush3.bf16.msra.mxu1 %v3744_v52  ;;  %v1574_v52 = vrot.slane %v1572_v15, 5  ;;  %v1864_v15 = vrot.slane %v4267_v12, 5 }
 0x136   : > { %3496 = vmatprep.subr.bf16.mxu1 %v3747_v4  ;;  %3527 = vmatmul.mubr.bf16.gmra.mxu0 %v3748_v16  ;;  %v2226_v16 = vshrl.u32 %v2197_v59, 16 }
 0x137   : > { %3559 = vmatpush3.bf16.msra.mxu0 %v3749_v60  ;;  %3570 = vmatprep.mubr.bf16.mxu0 %v3150_v26  ;;  %v1575_v60 = vsel %vm4049_vm8, %v1570_v5, %v1574_v52  ;;  %v1860_v26 = vrot.slane %v4249_v54, 5  ;;  %v4294_v5 = vld [vmem:[#allocation2 + $0x14] sm:$0x1] }
 0x138   : > { %3560 = vmatprep.subr.bf16.mxu0 %v3751_v11  ;;  %v2228_v41 = vrot.slane %v2226_v16, 4  ;;  %v2221_v59 = vshll.u32 %v4294_v5, 16 }
 0x139   : > { %3497 = vmatpush3.bf16.msra.mxu1 %v3747_v4  ;;  %v1561_v4 = vsel %vm4049_vm8, %v1556_v24, %v1560_v56  ;;  %v1608_v24 = vshll.u32 %v1540_v39, 16  ;;  %v3760_v56 = vld [vmem:[%s4561_s2 + $0x110] sm:$0xff]  }
 0x13a   : > { %3530 = vmatprep.subr.bf16.mxu1 %v3750_v47  ;;  %v3114_v19 = vcombine.low %v1561_v4, %v1575_v60  ;;  %v2223_v23 = vrot.slane %v2221_v59, 5  ;;  %v2203_v59 = vld [vmem:[#allocation2 + $0x30] sm:$0xf] }
 0x13b   : > { %3561 = vmatpush3.bf16.msra.mxu0 %v3751_v11  ;;  %v2215_v11 = vshll.u32 %v2195_v58, 16  ;;  %v1610_v4 = vrot.slane %v1608_v24, 5  ;;  %v1642_v24 = vshll.u32 %v4267_v12, 16 }
 0x13c   : > { %3499 = vmatmul.mubr.bf16.vlgmr.msra.gmra.mxu1 %v3059_v34  ;;  %3562 = vmatprep.subr.bf16.mxu0 %v3753_v31  ;;  %v1542_v34 = vld [vmem:[#allocation2 + $0x30] sm:$0xf] }
 0x13d   : > { %3502 = vmatprep.mubr.bf16.mxu1 %v3060_v46  ;;  %3531 = vmatpush3.bf16.msra.mxu1 %v3750_v47  ;;  %v3131_v47 = vrot.slane %v1819_v0, 9  ;;  %v2217_v37 = vrot.slane %v2215_v11, 5  ;;  %v3133_v46 = vrot.slane %v1821_v13, 9  ;;  %v1619_v50 = vshrl.u32 %v1542_v34, 16 }
 0x13e   : > { %3532 = vmatprep.subr.bf16.mxu1 %v3752_v43  ;;  %v1622_v7 = vshll.u32 %v1542_v34, 16  ;;  %v1865_v0 = vsel %vm4153_vm11, %v3132_v30, %v1864_v15 }
 0x13f   : > { %3563 = vmatpush3.bf16.msra.mxu0 %v3753_v31  ;;  %v1591_v31 = vshrl.u32 %v1538_v14, 16  ;;  %v1861_v55 = vsel %vm4153_vm11, %v3131_v47, %v1860_v26  ;;  %v2218_v58 = vor.u32 %v2217_v37, %v2214_v42  ;;  %v1621_v9 = vrot.slane %v1619_v50, 4  ;;  %v1546_v14 = vld [vmem:[#allocation2 + $0x40] sm:$0xf] }
 0x140   : > { %3564 = vmatprep.subr.bf16.mxu0 %v3755_v6  ;;  %v1624_v40 = vrot.slane %v1622_v7, 5  ;;  %v1869_v17 = vsel %vm4153_vm11, %v3133_v46, %v1868_v48  ;;  %v1614_v26 = vshll.u32 %v4238_v49, 16  ;;  %v1650_v13 = vshll.u32 %v1546_v14, 16 }
 0x141   : > { %3533 = vmatpush3.bf16.msra.mxu1 %v3752_v43  ;;  %v2231_v43 = vrot.slane %v2229_v18, 5  ;;  %v1593_v52 = vrot.slane %v1591_v31, 4  ;;  %v1600_v18 = vshll.u32 %v4236_v44, 16  ;;  %v3765_v44 = vld [vmem:[%s4561_s2 + $0x1e8] sm:$0xff]   ;;  %v3153_v31 = vcombine.low %v1865_v0, %v1869_v17 }
 0x142   : > { %3534 = vmatprep.subr.bf16.mxu1 %v3754_v25  ;;  %v1625_v35 = vor.u32 %v1624_v40, %v1621_v9  ;;  %v1586_v49 = vshll.u32 %v4263_v8, 16  ;;  %v1652_v8 = vrot.slane %v1650_v13, 5  ;;  %v1644_v0 = vrot.slane %v1642_v24, 5  ;;  %v2209_v9 = vld [vmem:[#allocation2 + $0x48] sm:$0xf]  ;;  %v3768_v40 = vld [vmem:[%s4561_s2 + $0x1b0] sm:$0xff]  }
 0x143   : > { %3565 = vmatpush3.bf16.msra.mxu0 %v3755_v6  ;;  %v4296_v6 = vld [vmem:[#allocation2 + $0x1c] sm:$0x1]  ;;  %v2232_v60 = vor.u32 %v2231_v43, %v2228_v41  ;;  %v1597_v16 = vor.u32 %v1596_v53, %v1593_v52  ;;  %v1602_v34 = vrot.slane %v1600_v18, 5  ;;  %v1616_v43 = vrot.slane %v1614_v26, 5  ;;  %v2199_v53 = vld [vmem:[#allocation2 + $0x20] sm:$0xf] }
 0x144   : > { %3503 = vmatmul.mubr.bf16.gmra.mxu1 %v3061_v3  ;;  %3566 = vmatprep.subr.bf16.mxu0 %v3757_v62  ;;  %v2235_v1 = vshll.u32 %v4296_v6, 16  ;;  %v1607_v3 = vrot.slane %v1605_v51, 4  ;;  %v1626_v46 = vrot.slane %v1625_v35, 4  ;;  %v3767_v51 = vld [vmem:[%s4561_s2 + $0x1e0] sm:$0xff]   ;;  %v1588_v50 = vrot.slane %v1586_v49, 5  ;;  %v3766_v52 = vld [vmem:[%s4561_s2 + $0x1b8] sm:$0xff]  }
 0x145   : > { %3535 = vmatpush3.bf16.msra.mxu1 %v3754_v25  ;;  %3546 = vmatprep.mubr.bf16.mxu1 %v3114_v19  ;;  %v1582_v25 = vrot.slane %v1580_v32, 5  ;;  %v3762_v19 = vld [vmem:[%s4561_s2 + $0x108] sm:$0xff]   ;;  %v2233_v47 = vrot.slane %v2232_v60, 4  ;;  %v1628_v32 = vshll.u32 %v4249_v54, 16  ;;  %v1598_v38 = vrot.slane %v1597_v16, 4 }
 0x146   : > { %3536 = vmatprep.subr.bf16.mxu1 %v3756_v61  ;;  %v2237_v30 = vrot.slane %v2235_v1, 5  ;;  %v1611_v39 = vor.u32 %v1610_v4, %v1607_v3  ;;  %v1635_v54 = vrot.slane %v1633_v28, 4  ;;  %v2205_v60 = vld [vmem:[#allocation2 + $0x38] sm:$0xf]  ;;  %v2271_v17 = vshll.u32 %v2203_v59, 16  ;;  %v3770_v26 = vld [vmem:[%s4561_s2 + $0x1a8] sm:$0xff]  }
 0x147   : > { %3567 = vmatpush3.bf16.msra.mxu0 %v3757_v62  ;;  %v3151_v62 = vcombine.low %v1849_v57, %v1853_v10  ;;  %v1583_v11 = vor.u32 %v1582_v25, %v1579_v21  ;;  %v1636_v10 = vshll.u32 %v1544_v2, 16  ;;  %v1630_v48 = vrot.slane %v1628_v32, 5  ;;  %v2207_v32 = vld [vmem:[#allocation2 + $0x40] sm:$0xf] }
 0x148   : > { %3568 = vmatprep.subr.bf16.mxu0 %v3759_v20  ;;  %v2238_v41 = vsel %vm4049_vm8, %v2233_v47, %v2237_v30  ;;  %v1612_v15 = vrot.slane %v1611_v39, 4  ;;  %v1603_v7 = vsel %vm4049_vm8, %v1598_v38, %v1602_v34  ;;  %v1656_v25 = vshll.u32 %v4274_v27, 16  ;;  %v3772_v47 = vld [vmem:[%s4561_s2 + $0x1d0] sm:$0xff]   ;;  %v4362_v38 = vld [vmem:[#allocation2 + $0x2c] sm:$0x1] }
 0x149   : > { %3537 = vmatpush3.bf16.msra.mxu1 %v3756_v61  ;;  %v3152_v61 = vcombine.low %v4281_v29, %v1861_v55  ;;  %v1647_v29 = vshrl.u32 %v1546_v14, 16  ;;  %v1584_v42 = vrot.slane %v1583_v11, 4  ;;  %v2240_v2 = vshrl.u32 %v2199_v53, 16 }
 0x14a   : > { %3538 = vmatprep.subr.bf16.mxu1 %v3758_v36  ;;  %v1617_v27 = vsel %vm4049_vm8, %v1612_v15, %v1616_v43  ;;  %v1658_v1 = vrot.slane %v1656_v25, 5  ;;  %v2268_v14 = vshrl.u32 %v2203_v59, 16  ;;  %v2282_v11 = vshrl.u32 %v2205_v60, 16  ;;  %v4370_v43 = vld [vmem:[#allocation2 + $0x34] sm:$0x1]  ;;  %v3776_v25 = vld [vmem:[%s4561_s2 + $0x1c0] sm:$0xff]  }
 0x14b   : > { %3569 = vmatpush3.bf16.msra.mxu0 %v3759_v20  ;;  %v2219_v20 = vrot.slane %v2218_v58, 4  ;;  %v1649_v55 = vrot.slane %v1647_v29, 4  ;;  %v1589_v57 = vsel %vm4049_vm8, %v1584_v42, %v1588_v50  ;;  %v2285_v16 = vshll.u32 %v2205_v60, 16  ;;  %v3774_v42 = vld [vmem:[%s4561_s2 + $0x1c8] sm:$0xff]   ;;  %v3775_v60 = vld [vmem:[%s4561_s2 + $0x198] sm:$0xff]  }
 0x14c   : > { %3602 = vmatprep.subr.bf16.mxu0 %v3761_v45  ;;  %v2310_v29 = vshrl.u32 %v2209_v9, 16  ;;  %v2313_v13 = vshll.u32 %v2209_v9, 16  ;;  %v2273_v30 = vrot.slane %v2271_v17, 5  ;;  %v2284_v39 = vrot.slane %v2282_v11, 4  ;;  %v3777_v11 = vld [vmem:[%s4561_s2 + $0x190] sm:$0xff]  }
 0x14d   : > { %3539 = vmatpush3.bf16.msra.mxu1 %v3758_v36  ;;  %v3764_v36 = vld [vmem:[%s4561_s2 + $0x100] sm:$0xff]   ;;  %v2224_v37 = vsel %vm4049_vm8, %v2219_v20, %v2223_v23  ;;  %v1653_v58 = vor.u32 %v1652_v8, %v1649_v55  ;;  %v2243_v23 = vshll.u32 %v2199_v53, 16  ;;  %v2287_v35 = vrot.slane %v2285_v16, 5 }
 0x14e   : > { %3540 = vmatprep.subr.bf16.mxu1 %v3760_v56  ;;  %3571 = vmatmul.mubr.bf16.vlgmr.msra.gmra.mxu0 %v3151_v62  ;;  %v3206_v21 = vcombine.low %v2224_v37, %v2238_v41  ;;  %v3115_v62 = vcombine.low %v1589_v57, %v1603_v7  ;;  %v2242_v34 = vrot.slane %v2240_v2, 4  ;;  %v4367_v37 = vld [vmem:[#allocation2 + $0x24] sm:$0x1]  ;;  %v2263_v41 = vshll.u32 %v4362_v38, 16  ;;  %v3771_v7 = vld [vmem:[#allocation2 + $0x10] ss:$8 sps:$4 sm:$0xff]  }
 0x14f   : > { %3574 = vmatprep.mubr.bf16.mxu0 %v3152_v61  ;;  %3603 = vmatpush3.bf16.msra.mxu0 %v3761_v45  ;;  %v1638_v45 = vrot.slane %v1636_v10, 5  ;;  %v1631_v61 = vsel %vm4049_vm8, %v1626_v46, %v1630_v48  ;;  %v1654_v20 = vrot.slane %v1653_v58, 4  ;;  %v2277_v55 = vshll.u32 %v4370_v43, 16  ;;  %v3773_v48 = vld [vmem:[%s4561_s2 + $0x1a0] sm:$0xff]  }
 0x150   : > { %3604 = vmatprep.subr.bf16.mxu0 %v3763_v63  ;;  %v3116_v18 = vcombine.low %v1617_v27, %v1631_v61  ;;  %v2296_v8 = vshrl.u32 %v2207_v32, 16  ;;  %v2299_v15 = vshll.u32 %v2207_v32, 16  ;;  %v2288_v24 = vor.u32 %v2287_v35, %v2284_v39  ;;  %v4388_v2 = vld [vmem:[#allocation2 + $0x44] sm:$0x1]  ;;  %v3781_v35 = vld [vmem:[%s4561_s2 + $0x238] sm:$0xff]  }
 0x151   : > { %3541 = vmatpush3.bf16.msra.mxu1 %v3760_v56  ;;  %v2201_v56 = vld [vmem:[#allocation2 + $0x28] sm:$0xf]  ;;  %v1639_v12 = vor.u32 %v1638_v45, %v1635_v54  ;;  %v1659_v49 = vsel %vm4049_vm8, %v1654_v20, %v1658_v1  ;;  %v4372_v45 = vld [vmem:[#allocation2 + $0x3c] sm:$0x1]  ;;  %v2312_v53 = vrot.slane %v2310_v29, 4  ;;  %v2279_v27 = vrot.slane %v2277_v55, 5 }
 0x152   : > { %3542 = vmatprep.subr.bf16.mxu1 %v3762_v19  ;;  %v2254_v3 = vshrl.u32 %v2201_v56, 16  ;;  %v2257_v4 = vshll.u32 %v2201_v56, 16  ;;  %v2291_v50 = vshll.u32 %v4372_v45, 16  ;;  %v2315_v56 = vrot.slane %v2313_v13, 5  ;;  %v4386_v1 = vld [vmem:[#allocation2 + $0x4c] sm:$0x1] }
 0x153   : > { %3605 = vmatpush3.bf16.msra.mxu0 %v3763_v63  ;;  %v3769_v63 = vld [vmem:[%s4561_s2 + $0x1d8] sm:$0xff]   ;;  %v2298_v58 = vrot.slane %v2296_v8, 4  ;;  %v2301_v59 = vrot.slane %v2299_v15, 5  ;;  %v2289_v61 = vrot.slane %v2288_v24, 4  ;;  %v2305_v17 = vshll.u32 %v4388_v2, 16  ;;  %v3778_v29 = vld [vmem:[%s4561_s2 + $0x188] sm:$0xff]  }
 0x154   : > { %3606 = vmatprep.subr.bf16.mxu0 %v3765_v44  ;;  %v2256_v28 = vrot.slane %v2254_v3, 4  ;;  %v2259_v10 = vrot.slane %v2257_v4, 5  ;;  %v2316_v3 = vor.u32 %v2315_v56, %v2312_v53  ;;  %v2319_v4 = vshll.u32 %v4386_v1, 16  ;;  %v2477_v32 = vld [vmem:[#allocation2 + $0x10] sm:$0xe]  ;;  %v3789_v24 = vld [vmem:[%s4561_s2 + $0x208] sm:$0xff]  }
 0x155   : > { %3543 = vmatpush3.bf16.msra.mxu1 %v3762_v19  ;;  %v1640_v19 = vrot.slane %v1639_v12, 4  ;;  %v2265_v12 = vrot.slane %v2263_v41, 5  ;;  %v3785_v41 = vld [vmem:[%s4561_s2 + $0x228] sm:$0xff]   ;;  %v2507_v55 = vrot.slane %v4296_v6, 5  ;;  %v3787_v6 = vld [vmem:[%s4561_s2 + $0x218] sm:$0xff]   ;;  %v2515_v56 = vrot.slane %v4362_v38, 5 }
 0x156   : > { %3544 = vmatprep.subr.bf16.mxu1 %v3764_v36  ;;  %3575 = vmatmul.mubr.bf16.gmra.mxu0 %v3153_v31  ;;  %v2260_v54 = vor.u32 %v2259_v10, %v2256_v28  ;;  %v2307_v28 = vrot.slane %v2305_v17, 5  ;;  %v2321_v10 = vrot.slane %v2319_v4, 5  ;;  %v3784_v15 = vld [vmem:[#allocation2 + $0x40] ss:$8 sps:$4 sm:$0xff]  }
 0x157   : > { %3607 = vmatpush3.bf16.msra.mxu0 %v3765_v44  ;;  %3618 = vmatprep.mubr.bf16.mxu0 %v3206_v21  ;;  %v2270_v44 = vrot.slane %v2268_v14, 4  ;;  %v1645_v31 = vsel %vm4049_vm8, %v1640_v19, %v1644_v0  ;;  %v2302_v14 = vor.u32 %v2301_v59, %v2298_v58  ;;  %v2523_v59 = vrot.slane %v4372_v45, 5 }
 0x158   : > { %3608 = vmatprep.subr.bf16.mxu0 %v3767_v51  ;;  %v3117_v46 = vcombine.low %v1645_v31, %v1659_v49  ;;  %v2261_v57 = vrot.slane %v2260_v54, 4  ;;  %v3780_v31 = vld [vmem:[#allocation2 + $0x20] ss:$8 sps:$4 sm:$0xff]   ;;  %v3782_v49 = vld [vmem:[#allocation2 + $0x30] ss:$8 sps:$4 sm:$0xff]  }
 0x159   : > { %3545 = vmatpush3.bf16.msra.mxu1 %v3764_v36  ;;  %v2245_v36 = vrot.slane %v2243_v23, 5  ;;  %v2317_v23 = vrot.slane %v2316_v3, 4 }
 0x15a   : > { %3578 = vmatprep.subr.bf16.mxu1 %v3766_v52 }
 0x15b   : > { %3609 = vmatpush3.bf16.msra.mxu0 %v3767_v51  ;;  %v2274_v51 = vor.u32 %v2273_v30, %v2270_v44  ;;  %v2246_v21 = vor.u32 %v2245_v36, %v2242_v34  ;;  %v2322_v44 = vsel %vm4049_vm8, %v2317_v23, %v2321_v10  ;;  %v3779_v30 = vld [vmem:[%s4561_s2 + $0x180] sm:$0xff]   ;;  %v2478_v34 = vld [vmem:[#allocation2 + $0x18] sm:$0xe]  ;;  %v3218_v36 = vrot.slane %v2477_v32, 9  ;;  %v3796_v23 = vld [vmem:[%s4562_s3 + $0x10] sm:$0xff]  }
 0x15c   : > { %3547 = vmatmul.mubr.bf16.vlgmr.msra.gmra.mxu1 %v3115_v62  ;;  %3610 = vmatprep.subr.bf16.mxu0 %v3769_v63  ;;  %v3219_v54 = vrot.slane %v2478_v34, 9  ;;  %v3798_v10 = vld [vmem:[%s4562_s3] sm:$0xff]  }
 0x15d   : > { %3550 = vmatprep.mubr.bf16.mxu1 %v3116_v18  ;;  %3579 = vmatpush3.bf16.msra.mxu1 %v3766_v52  ;;  %v2249_v52 = vshll.u32 %v4367_v37, 16  ;;  %v2275_v62 = vrot.slane %v2274_v51, 4  ;;  %v2247_v0 = vrot.slane %v2246_v21, 4  ;;  %v3788_v51 = vld [vmem:[%s4561_s2 + $0x210] sm:$0xff]   ;;  %v2482_v21 = vld [vmem:[#allocation2 + $0x38] sm:$0xe] }
 0x15e   : > { %3580 = vmatprep.subr.bf16.mxu1 %v3768_v40  ;;  %v3223_v58 = vrot.slane %v2482_v21, 9 }
 0x15f   : > { %3611 = vmatpush3.bf16.msra.mxu0 %v3769_v63  ;;  %v2293_v63 = vrot.slane %v2291_v50, 5  ;;  %v2251_v9 = vrot.slane %v2249_v52, 5  ;;  %v2280_v16 = vsel %vm4049_vm8, %v2275_v62, %v2279_v27  ;;  %v2480_v50 = vld [vmem:[#allocation2 + $0x28] sm:$0xe]  ;;  %v2479_v52 = vld [vmem:[#allocation2 + $0x20] sm:$0xe] }
 0x160   : > { %3612 = vmatprep.subr.bf16.mxu0 %v3772_v47  ;;  %v3221_v53 = vrot.slane %v2480_v50, 9  ;;  %v2511_v62 = vrot.slane %v4367_v37, 5  ;;  %v2524_v38 = vsel %vm4153_vm11, %v3223_v58, %v2523_v59 }
 0x161   : > { %3581 = vmatpush3.bf16.msra.mxu1 %v3768_v40  ;;  %v2266_v40 = vsel %vm4049_vm8, %v2261_v57, %v2265_v12  ;;  %v2294_v18 = vsel %vm4049_vm8, %v2289_v61, %v2293_v63  ;;  %v2252_v19 = vsel %vm4049_vm8, %v2247_v0, %v2251_v9  ;;  %v2519_v12 = vrot.slane %v4370_v43, 5  ;;  %v2484_v61 = vld [vmem:[#allocation2 + $0x48] sm:$0xe]  ;;  %v2483_v0 = vld [vmem:[#allocation2 + $0x40] sm:$0xe] }
 0x162   : > { %3582 = vmatprep.subr.bf16.mxu1 %v3770_v26  ;;  %v3207_v20 = vcombine.low %v2252_v19, %v2266_v40  ;;  %v2516_v27 = vsel %vm4153_vm11, %v3221_v53, %v2515_v56  ;;  %v3225_v3 = vrot.slane %v2484_v61, 9  ;;  %v3224_v37 = vrot.slane %v2483_v0, 9  ;;  %v3795_v19 = vld [vmem:[%s4562_s3 + $0x18] sm:$0xff]  }
 0x163   : > { %3613 = vmatpush3.bf16.msra.mxu0 %v3772_v47  ;;  %v3208_v47 = vcombine.low %v2280_v16, %v2294_v18  ;;  %v2527_v9 = vrot.slane %v4388_v2, 5  ;;  %v2531_v40 = vrot.slane %v4386_v1, 5  ;;  %v3791_v16 = vld [vmem:[%s4562_s3 + $0x38] sm:$0xff]   ;;  %v3792_v2 = vld [vmem:[%s4562_s3 + $0x30] sm:$0xff]   ;;  %v3794_v1 = vld [vmem:[%s4562_s3 + $0x20] sm:$0xff]  }
 0x164   : > { %3551 = vmatmul.mubr.bf16.gmra.mxu1 %v3117_v46  ;;  %3614 = vmatprep.subr.bf16.mxu0 %v3774_v42  ;;  %v2508_v46 = vsel %vm4153_vm11, %v3219_v54, %v2507_v55 }
 0x165   : > { %3583 = vmatpush3.bf16.msra.mxu1 %v3770_v26  ;;  %3594 = vmatprep.mubr.bf16.mxu1 %v3771_v7  ;;  %v2303_v26 = vrot.slane %v2302_v14, 4  ;;  %v2481_v7 = vld [vmem:[#allocation2 + $0x30] sm:$0xe]  ;;  %v2528_v14 = vsel %vm4153_vm11, %v3224_v37, %v2527_v9  ;;  %v2532_v17 = vsel %vm4153_vm11, %v3225_v3, %v2531_v40 }
 0x166   : > { %3584 = vmatprep.subr.bf16.mxu1 %v3773_v48  ;;  %v3222_v57 = vrot.slane %v2481_v7, 9 }
 0x167   : > { %3615 = vmatpush3.bf16.msra.mxu0 %v3774_v42  ;;  %v2308_v13 = vsel %vm4049_vm8, %v2303_v26, %v2307_v28  ;;  %v2503_v42 = vrot.slane %v4294_v5, 5  ;;  %v3786_v5 = vld [vmem:[%s4561_s2 + $0x220] sm:$0xff]   ;;  %v3797_v26 = vld [vmem:[%s4562_s3 + $0x8] sm:$0xff]  }
 0x168   : > { %3616 = vmatprep.subr.bf16.mxu0 %v3776_v25  ;;  %v3209_v39 = vcombine.low %v2308_v13, %v2322_v44  ;;  %v2520_v63 = vsel %vm4153_vm11, %v3222_v57, %v2519_v12 }
 0x169   : > { %3585 = vmatpush3.bf16.msra.mxu1 %v3773_v48  ;;  %v2504_v8 = vsel %vm4153_vm11, %v3218_v36, %v2503_v42  ;;  %v3244_v4 = vcombine.low %v2520_v63, %v2524_v38 }
 0x16a   : > { %3586 = vmatprep.subr.bf16.mxu1 %v3775_v60  ;;  %v3242_v48 = vcombine.low %v2504_v8, %v2508_v46 }
 0x16b   : > { %3617 = vmatpush3.bf16.msra.mxu0 %v3776_v25  ;;  %v3790_v25 = vld [vmem:[%s4561_s2 + $0x200] sm:$0xff]  }
 0x16c   : > { %3650 = vmatprep.subr.bf16.mxu0 %v3791_v16 }
 0x16d   : > { %3587 = vmatpush3.bf16.msra.mxu1 %v3775_v60  ;;  %v3220_v60 = vrot.slane %v2479_v52, 9 }
 0x16e   : > { %3588 = vmatprep.subr.bf16.mxu1 %v3777_v11  ;;  %3619 = vmatmul.mubr.bf16.vlgmr.msra.gmra.mxu0 %v3207_v20 }
 0x16f   : > { %3622 = vmatprep.mubr.bf16.mxu0 %v3208_v47  ;;  %v2512_v43 = vsel %vm4153_vm11, %v3220_v60, %v2511_v62  ;;  %3651 = vmatpush3.bf16.msra.mxu0 %v3791_v16 }
 0x170   : > { %v3243_v45 = vcombine.low %v2512_v43, %v2516_v27  ;;  %3652 = vmatprep.subr.bf16.mxu0 %v3792_v2 }
 0x171   : > { %3589 = vmatpush3.bf16.msra.mxu1 %v3777_v11  ;;  %v3245_v11 = vcombine.low %v2528_v14, %v2532_v17 }
 0x172   : > { %3590 = vmatprep.subr.bf16.mxu1 %v3778_v29 }
 0x173   : > { %3653 = vmatpush3.bf16.msra.mxu0 %v3792_v2 }
 0x174   : > { %3654 = vmatprep.subr.bf16.mxu0 %v3793_v33 }
 0x175   : > { %3591 = vmatpush3.bf16.msra.mxu1 %v3778_v29 }
 0x176   : > { %3592 = vmatprep.subr.bf16.mxu1 %v3779_v30  ;;  %3623 = vmatmul.mubr.bf16.gmra.mxu0 %v3209_v39 }
 0x177   : > { %3655 = vmatpush3.bf16.msra.mxu0 %v3793_v33 }
 0x178   : > { %3656 = vmatprep.subr.bf16.mxu0 %v3794_v1 }
 0x179   : > { %3593 = vmatpush3.bf16.msra.mxu1 %v3779_v30 }
 0x17a   : > { %3626 = vmatprep.subr.bf16.mxu1 %v3781_v35 }
 0x17b   : > { %3657 = vmatpush3.bf16.msra.mxu0 %v3794_v1 }
 0x17c   : > { %3595 = vmatmul.mubr.bf16.vlgmr.msra.gmra.mxu1 %v3780_v31  ;;  %3658 = vmatprep.subr.bf16.mxu0 %v3795_v19 }
 0x17d   : > { %3598 = vmatprep.mubr.bf16.mxu1 %v3782_v49  ;;  %3627 = vmatpush3.bf16.msra.mxu1 %v3781_v35 }
 0x17e   : > { %3628 = vmatprep.subr.bf16.mxu1 %v3783_v22 }
 0x17f   : > { %3659 = vmatpush3.bf16.msra.mxu0 %v3795_v19 }
 0x180   : > { %3660 = vmatprep.subr.bf16.mxu0 %v3796_v23 }
 0x181   : > { %3629 = vmatpush3.bf16.msra.mxu1 %v3783_v22 }
 0x182   : > { %3630 = vmatprep.subr.bf16.mxu1 %v3785_v41 }
 0x183   : > { %3661 = vmatpush3.bf16.msra.mxu0 %v3796_v23 }
 0x184   : > { %3599 = vmatmul.mubr.bf16.gmra.mxu1 %v3784_v15  ;;  %3662 = vmatprep.subr.bf16.mxu0 %v3797_v26 }
 0x185   : > { %3631 = vmatpush3.bf16.msra.mxu1 %v3785_v41  ;;  %3642 = vmatprep.mubr.bf16.mxu1 %v3242_v48 }
 0x186   : > { %3632 = vmatprep.subr.bf16.mxu1 %v3786_v5 }
 0x187   : > { %3663 = vmatpush3.bf16.msra.mxu0 %v3797_v26 }
 0x188   : > { %3664 = vmatprep.subr.bf16.mxu0 %v3798_v10 }
 0x189   : > { %3633 = vmatpush3.bf16.msra.mxu1 %v3786_v5 }
 0x18a   : > { %3634 = vmatprep.subr.bf16.mxu1 %v3787_v6 }
 0x18b   : > { %3665 = vmatpush3.bf16.msra.mxu0 %v3798_v10 }
 0x18d   : > { %3635 = vmatpush3.bf16.msra.mxu1 %v3787_v6 }
 0x18e   : > { %3636 = vmatprep.subr.bf16.mxu1 %v3788_v51 }
 0x191   : > { %3637 = vmatpush3.bf16.msra.mxu1 %v3788_v51 }
 0x192   : > { %3638 = vmatprep.subr.bf16.mxu1 %v3789_v24 }
 0x195   : > { %3639 = vmatpush3.bf16.msra.mxu1 %v3789_v24 }
 0x196   : > { %3640 = vmatprep.subr.bf16.mxu1 %v3790_v25 }
 0x199   : > { %3641 = vmatpush3.bf16.msra.mxu1 %v3790_v25 }
 0x19a   : > { %3674 = vmatprep.subr.bf16.mxu1 %v3791_v16 }
 0x19c   : > { %3643 = vmatmul.mubr.bf16.vlgmr.msra.gmra.mxu1 %v3243_v45 }
 0x19d   : > { %3646 = vmatprep.mubr.bf16.mxu1 %v3244_v4  ;;  %3682 = vmatpush3.bf16.msra.mxu1 %v3791_v16 }
 0x19e   : > { %3675 = vmatprep.subr.bf16.mxu1 %v3792_v2 }
 0x1a1   : > { %3683 = vmatpush3.bf16.msra.mxu1 %v3792_v2 }
 0x1a2   : > { %3676 = vmatprep.subr.bf16.mxu1 %v3793_v33 }
 0x1a4   : > { %3647 = vmatmul.mubr.bf16.gmra.mxu1 %v3245_v11 }
 0x1a5   : > { %3684 = vmatpush3.bf16.msra.mxu1 %v3793_v33 }
 0x1a6   : > { %3677 = vmatprep.subr.bf16.mxu1 %v3794_v1 }
 0x1a9   : > { %3685 = vmatpush3.bf16.msra.mxu1 %v3794_v1 }
 0x1aa   : > { %3678 = vmatprep.subr.bf16.mxu1 %v3795_v19 }
 0x1ad   : > { %3686 = vmatpush3.bf16.msra.mxu1 %v3795_v19 }
 0x1ae   : > { %3679 = vmatprep.subr.bf16.mxu1 %v3796_v23 }
 0x1b1   : > { %3687 = vmatpush3.bf16.msra.mxu1 %v3796_v23 }
 0x1b2   : > { %3680 = vmatprep.subr.bf16.mxu1 %v3797_v26 }
 0x1b5   : > { %3688 = vmatpush3.bf16.msra.mxu1 %v3797_v26 }
 0x1b6   : > { %3681 = vmatprep.subr.bf16.mxu1 %v3798_v10 }
 0x1b9   : > { %3689 = vmatpush3.bf16.msra.mxu1 %v3798_v10 }
 0x1ce   : > { %v3476_v29 = vpop.f32.mrf.mxu0 }
 0x1d0   : > { %v1118_v44 = vpop.f32.mrf.mxu0 }
 0x1d2   : > { %v3477_v39 = vpop.f32.mrf.mxu0 }
 0x1d4   : > { %v1121_v32 = vpop.f32.mrf.mxu0 }
 0x1da   : > { %v3480_v22 = vpop.f32.mrf.mxu0 }
 0x1dc   : > { %v4473_v18 = vpop.f32.mrf.mxu1  ;;  %v1134_v34 = vpop.f32.mrf.mxu0 }
 0x1dd   : > { %v1127_v37 = vadd.f32 %v3476_v29, %v4473_v18 }
 0x1de   : > { %v4478_v20 = vpop.f32.mrf.mxu1  ;;  %v3481_v42 = vpop.f32.mrf.mxu0 }
 0x1df   : > { %v1119_v14 = vadd.f32 %v1118_v44, %v4478_v20 }
 0x1e0   : > { %v4483_v47 = vpop.f32.mrf.mxu1  ;;  %v1137_v54 = vpop.f32.mrf.mxu0 }
 0x1e1   : > { %v1130_v16 = vadd.f32 %v3477_v39, %v4483_v47 }
 0x1e2   : > { %v4488_v28 = vpop.f32.mrf.mxu1 }
 0x1e3   : > { %v1122_v1 = vadd.f32 %v1121_v32, %v4488_v28 }
 0x1e4   : > { %v4493_v13 = vpop.f32.mrf.mxu1 }
 0x1e5   : > { %v1143_v18 = vadd.f32 %v3480_v22, %v4493_v13 }
 0x1e6   : > { %v997_v30 = vpop.f32.mrf.mxu1 }
 0x1e7   : > { %v1135_v29 = vadd.f32 %v1134_v34, %v997_v30 }
 0x1e8   : > { %v4495_v35 = vpop.f32.mrf.mxu1 }
 0x1ea   : > { %v4497_v31 = vpop.f32.mrf.mxu1 }
 0x1ee   : > { %v3524_v8 = vpop.f32.mrf.mxu0 }
 0x1f0   : > { %v1493_v46 = vpop.f32.mrf.mxu0 }
 0x1f2   : > { %v3525_v48 = vpop.f32.mrf.mxu0 }
 0x1f4   : > { %v1496_v51 = vpop.f32.mrf.mxu0 }
 0x1f6   : > { %v3528_v50 = vpop.f32.mrf.mxu0 }
 0x1f8   : > { %v1509_v21 = vpop.f32.mrf.mxu0 }
 0x1fa   : > { %v4499_v52 = vpop.f32.mrf.mxu0 }
 0x1fc   : > { %v3500_v49 = vpop.f32.mrf.mxu1  ;;  %v4501_v56 = vpop.f32.mrf.mxu0 }
 0x1fd   : > { %4578 = vst [vmem:[#allocation3_spill] sm:$0xff] %v4501_v56  ;;  %v1356_v17 = vadd.f32 %v3500_v49, %v1127_v37 }
 0x1fe   : > { %v1323_v36 = vpop.f32.mrf.mxu1 }
 0x1ff   : > { %v1354_v2 = vadd.f32 %v1323_v36, %v1119_v14  ;;  %v1526_v23 = vadd.f32 %v3524_v8, %v1356_v17  ;;  %v1146_v36 = vadd.f32 %v3481_v42, %v4495_v35 }
 0x200   : > { %v3501_v41 = vpop.f32.mrf.mxu1 }
 0x201   : > { %v1357_v19 = vadd.f32 %v3501_v41, %v1130_v16  ;;  %v1138_v41 = vadd.f32 %v1137_v54, %v4497_v31 }
 0x202   : > { %v1326_v55 = vpop.f32.mrf.mxu1 }
 0x203   : > { %v1355_v10 = vadd.f32 %v1326_v55, %v1122_v1  ;;  %v1527_v20 = vadd.f32 %v3525_v48, %v1357_v19  ;;  %v3255_v19 = vld [vmem:[%s4566_s7] ss:$0 sm:$0xff] }
 0x204   : > { %v3504_v15 = vpop.f32.mrf.mxu1  ;;  %v4582_v54 = vld [vmem:[#allocation3_spill] sm:$0xff] }
 0x205   : > { %v1360_v44 = vadd.f32 %v3504_v15, %v1143_v18  ;;  %v1525_v39 = vadd.f32 %v1496_v51, %v1355_v10 }
 0x206   : > { %v1339_v5 = vpop.f32.mrf.mxu1 }
 0x207   : > { %v1358_v49 = vadd.f32 %v1339_v5, %v1135_v29  ;;  %v1530_v13 = vadd.f32 %v3528_v50, %v1360_v44 }
 0x208   : > { %v3505_v6 = vpop.f32.mrf.mxu1 }
 0x209   : > { %v1528_v30 = vadd.f32 %v1509_v21, %v1358_v49 }
 0x20a   : > { %v1342_v24 = vpop.f32.mrf.mxu1 }
 0x20e   : > { %v3572_v12 = vpop.f32.mrf.mxu0 }
 0x210   : > { %v1985_v59 = vpop.f32.mrf.mxu0 }
 0x212   : > { %v3573_v62 = vpop.f32.mrf.mxu0 }
 0x214   : > { %v1988_v61 = vpop.f32.mrf.mxu0 }
 0x216   : > { %v3576_v38 = vpop.f32.mrf.mxu0 }
 0x218   : > { %v2001_v43 = vpop.f32.mrf.mxu0 }
 0x21a   : > { %v4505_v3 = vpop.f32.mrf.mxu0 }
 0x21b   : > { %4580 = vst [vmem:[#allocation5_spill] sm:$0xff] %v4505_v3  ;;  %v1524_v3 = vadd.f32 %v1493_v46, %v1354_v2  ;;  %v1361_v46 = vadd.f32 %v3505_v6, %v1146_v36 }
 0x21c   : > { %v3548_v7 = vpop.f32.mrf.mxu1  ;;  %v4508_v9 = vpop.f32.mrf.mxu0 }
 0x21d   : > { %4581 = vst [vmem:[#allocation6_spill] sm:$0xff] %v4508_v9  ;;  %v1808_v9 = vadd.f32 %v3548_v7, %v1526_v23  ;;  %v1359_v7 = vadd.f32 %v1342_v24, %v1138_v41  ;;  %v1531_v35 = vadd.f32 %v4499_v52, %v1361_v46 }
 0x21e   : > { %v1775_v25 = vpop.f32.mrf.mxu1 }
 0x21f   : > { %v1806_v56 = vadd.f32 %v1775_v25, %v1524_v3  ;;  %v2018_v28 = vadd.f32 %v3572_v12, %v1808_v9 }
 0x220   : > { %v3549_v53 = vpop.f32.mrf.mxu1 }
 0x221   : > { %v1809_v47 = vadd.f32 %v3549_v53, %v1527_v20  ;;  %v2016_v8 = vadd.f32 %v1985_v59, %v1806_v56  ;;  %v1529_v56 = vadd.f32 %v4582_v54, %v1359_v7 }
 0x222   : > { %v1778_v57 = vpop.f32.mrf.mxu1 }
 0x223   : > { %v1807_v55 = vadd.f32 %v1778_v57, %v1525_v39  ;;  %v2019_v15 = vadd.f32 %v3573_v62, %v1809_v47 }
 0x224   : > { %v3552_v58 = vpop.f32.mrf.mxu1  ;;  %v4585_v2 = vld [vmem:[#allocation6_spill] sm:$0xff] }
 0x225   : > { %v1812_v5 = vadd.f32 %v3552_v58, %v1530_v13  ;;  %v2017_v3 = vadd.f32 %v1988_v61, %v1807_v55 }
 0x226   : > { %v1791_v60 = vpop.f32.mrf.mxu1 }
 0x227   : > { %v1810_v25 = vadd.f32 %v1791_v60, %v1528_v30  ;;  %v2022_v57 = vadd.f32 %v3576_v38, %v1812_v5  ;;  %v3254_v60 = vld [vmem:[%s4565_s6] ss:$0 sm:$0xff] }
 0x228   : > { %v3553_v27 = vpop.f32.mrf.mxu1 }
 0x229   : > { %v1813_v21 = vadd.f32 %v3553_v27, %v1531_v35  ;;  %v2020_v59 = vadd.f32 %v2001_v43, %v1810_v25  ;;  %v4584_v27 = vld [vmem:[#allocation5_spill] sm:$0xff] }
 0x22a   : > { %v4503_v63 = vpop.f32.mrf.mxu1 }
 0x22b   : > { %4579 = vst [vmem:[#allocation4_spill] sm:$0xff] %v4503_v63  ;;  %v2023_v38 = vadd.f32 %v4584_v27, %v1813_v21  ;;  %v3800_v27 = vld [vmem:[%s3896_s24] sm:$0xff] }
 0x22e   : > { %v3620_v11 = vpop.f32.mrf.mxu0 }
 0x230   : > { %v2438_v26 = vpop.f32.mrf.mxu0 }
 0x232   : > { %v3621_v37 = vpop.f32.mrf.mxu0  ;;  %v4583_v62 = vld [vmem:[#allocation4_spill] sm:$0xff] }
 0x233   : > { %v1811_v58 = vadd.f32 %v4583_v62, %v1529_v56  ;;  %v3265_v62 = vld [vmem:[%s4568_s9] ss:$0 sm:$0xff] }
 0x234   : > { %v2441_v22 = vpop.f32.mrf.mxu0 }
 0x235   : > { %v2021_v1 = vadd.f32 %v4585_v2, %v1811_v58 }
 0x236   : > { %v3624_v42 = vpop.f32.mrf.mxu0 }
 0x23c   : > { %v3596_v0 = vpop.f32.mrf.mxu1 }
 0x23d   : > { %v2189_v34 = vadd.f32 %v3596_v0, %v2018_v28 }
 0x23e   : > { %v2156_v45 = vpop.f32.mrf.mxu1 }
 0x23f   : > { %v2187_v48 = vadd.f32 %v2156_v45, %v2016_v8  ;;  %v2471_v12 = vadd.f32 %v3620_v11, %v2189_v34  ;;  %v2454_v45 = vpop.f32.mrf.mxu0 }
 0x240   : > { %v3597_v4 = vpop.f32.mrf.mxu1 }
 0x241   : > { %v2190_v51 = vadd.f32 %v3597_v4, %v2019_v15  ;;  %v2469_v50 = vadd.f32 %v2438_v26, %v2187_v48  ;;  %v3625_v10 = vpop.f32.mrf.mxu0 }
 0x242   : > { %v2159_v40 = vpop.f32.mrf.mxu1 }
 0x243   : > { %v2188_v6 = vadd.f32 %v2159_v40, %v2017_v3  ;;  %v2472_v52 = vadd.f32 %v3621_v37, %v2190_v51  ;;  %v2457_v55 = vpop.f32.mrf.mxu0 }
 0x244   : > { %v3600_v33 = vpop.f32.mrf.mxu1 }
 0x245   : > { %v2193_v4 = vadd.f32 %v3600_v33, %v2022_v57  ;;  %v2470_v11 = vadd.f32 %v2441_v22, %v2188_v6 }
 0x246   : > { %v2172_v63 = vpop.f32.mrf.mxu1 }
 0x247   : > { %v2191_v9 = vadd.f32 %v2172_v63, %v2020_v59  ;;  %v2475_v33 = vadd.f32 %v3624_v42, %v2193_v4  ;;  %v3799_v4 = vld [vmem:[%s3896_s24 + $0x10] sm:$0xff] }
 0x248   : > { %v3601_v32 = vpop.f32.mrf.mxu1 }
 0x249   : > { %v2194_v18 = vadd.f32 %v3601_v32, %v2023_v38  ;;  %v2473_v29 = vadd.f32 %v2454_v45, %v2191_v9 }
 0x24a   : > { %v2175_v53 = vpop.f32.mrf.mxu1 }
 0x24b   : > { %v2192_v20 = vadd.f32 %v2175_v53, %v2021_v1  ;;  %v2476_v46 = vadd.f32 %v3625_v10, %v2194_v18 }
 0x24d   : > { %v2474_v32 = vadd.f32 %v2457_v55, %v2192_v20 }
 0x25c   : > { %v3644_v31 = vpop.f32.mrf.mxu1 }
 0x25d   : > { %v2681_v24 = vadd.f32 %v3644_v31, %v2471_v12 }
 0x25e   : > { %v2648_v0 = vpop.f32.mrf.mxu1 }
 0x25f   : > { %v2679_v61 = vadd.f32 %v2648_v0, %v2469_v50  ;;  %v2696_v43 = vmul.f32 %v3254_v60, %v2681_v24  ;;  %v3264_v24 = vld [vmem:[%s4567_s8] ss:$0 sm:$0xff] }
 0x260   : > { %v3645_v14 = vpop.f32.mrf.mxu1 }
 0x261   : > { %v2694_v17 = vmul.f32 %v3254_v60, %v2679_v61  ;;  %v2682_v40 = vadd.f32 %v3645_v14, %v2472_v52  ;;  %v2711_v47 = vadd.f32 %v3255_v19, %v2696_v43 }
 0x262   : > { %v2651_v16 = vpop.f32.mrf.mxu1 }
 0x263   : > { %v2697_v23 = vmul.f32 %v3254_v60, %v2682_v40  ;;  %v2680_v26 = vadd.f32 %v2651_v16, %v2470_v11  ;;  %v2709_v44 = vadd.f32 %v3255_v19, %v2694_v17  ;;  %v2719_v7 = vmax.f32 %v2711_v47, 0.0  ;;  %v3803_v47 = vld [vmem:[%s3896_s24 + $0x30] sm:$0xff] }
 0x264   : > { %v3648_v63 = vpop.f32.mrf.mxu1 }
 0x265   : > { %v2712_v49 = vadd.f32 %v3255_v19, %v2697_v23  ;;  %v2695_v37 = vmul.f32 %v3254_v60, %v2680_v26  ;;  %v2685_v39 = vadd.f32 %v3648_v63, %v2475_v33  ;;  %v2717_v30 = vmax.f32 %v2709_v44, 0.0  ;;  %v3802_v63 = vld [vmem:[%s3896_s24 + $0x8] sm:$0xff] }
 0x266   : > { %v2664_v36 = vpop.f32.mrf.mxu1 }
 0x267   : > { %v2710_v28 = vadd.f32 %v3255_v19, %v2695_v37  ;;  %v2683_v41 = vadd.f32 %v2664_v36, %v2473_v29  ;;  %v2720_v8 = vmax.f32 %v2712_v49, 0.0  ;;  %v2700_v48 = vmul.f32 %v3254_v60, %v2685_v39 }
 0x268   : > { %v3649_v13 = vpop.f32.mrf.mxu1 }
 0x269   : > { %v2718_v22 = vmax.f32 %v2710_v28, 0.0  ;;  %v2698_v34 = vmul.f32 %v3254_v60, %v2683_v41  ;;  %v2686_v15 = vadd.f32 %v3649_v13, %v2476_v46  ;;  %v2726_v51 = vpack.c.bf16 %v2720_v8, %v2719_v7  ;;  %v3804_v8 = vld [vmem:[%s3896_s24 + $0x20] sm:$0xff] }
 0x26a   : > { %v2667_v5 = vpop.f32.mrf.mxu1  ;;  %v2715_v12 = vadd.f32 %v3255_v19, %v2700_v48 }
 0x26b   : > { %v2684_v25 = vadd.f32 %v2667_v5, %v2474_v32  ;;  %v2725_v53 = vpack.c.bf16 %v2718_v22, %v2717_v30  ;;  %v2701_v3 = vmul.f32 %v3254_v60, %v2686_v15  ;;  %v2713_v35 = vadd.f32 %v3255_v19, %v2698_v34  ;;  %v3805_v34 = vld [vmem:[%s3896_s24 + $0x38] sm:$0xff]  ;;  %v3806_v15 = vld [vmem:[%s3896_s24 + $0x28] sm:$0xff] }
 0x26c   : > { %v2723_v21 = vmax.f32 %v2715_v12, 0.0 }
 0x26d   : > { %v2699_v42 = vmul.f32 %v3254_v60, %v2684_v25  ;;  %3666 = vmatprep.mubr.bf16.mxu0 %v2725_v53  ;;  %v2716_v31 = vadd.f32 %v3255_v19, %v2701_v3  ;;  %v2721_v6 = vmax.f32 %v2713_v35, 0.0 }
 0x26e   : > { %3667 = vmatmul.mubr.bf16.vlgmr.msra.gmra.mxu0 %v2726_v51 }
 0x26f   : > { %v2714_v54 = vadd.f32 %v3255_v19, %v2699_v42  ;;  %v2724_v56 = vmax.f32 %v2716_v31, 0.0  ;;  %v3801_v19 = vld [vmem:[%s3896_s24 + $0x18] sm:$0xff] }
 0x271   : > { %v2722_v50 = vmax.f32 %v2714_v54, 0.0  ;;  %v2728_v59 = vpack.c.bf16 %v2724_v56, %v2723_v21 }
 0x273   : > { %v2727_v57 = vpack.c.bf16 %v2722_v50, %v2721_v6 }
 0x275   : > { %3670 = vmatprep.mubr.bf16.mxu1 %v2727_v57 }
 0x276   : > { %3671 = vmatmul.mubr.bf16.vlgmr.msra.gmra.mxu1 %v2728_v59 }
 0x32e   : > { %v3668_v0 = vpop.f32.mrf.mxu0 }
 0x32f   : > { %v2867_v58 = vmul.f32 %v3668_v0, %v3264_v24 }
 0x330   : > { %v2827_v60 = vpop.f32.mrf.mxu0 }
 0x331   : > { %v2882_v61 = vadd.f32 %v3265_v62, %v2867_v58  ;;  %v2865_v52 = vmul.f32 %v3264_v24, %v2827_v60 }
 0x332   : > { %v3669_v45 = vpop.f32.mrf.mxu0 }
 0x333   : > { %v2890_v9 = vadd.f32 %v3799_v4, %v2882_v61  ;;  %v2880_v14 = vadd.f32 %v3265_v62, %v2865_v52  ;;  %v2868_v17 = vmul.f32 %v3669_v45, %v3264_v24 }
 0x334   : > { %v2830_v40 = vpop.f32.mrf.mxu0 }
 0x335   : > { %v2898_v11 = vmax.f32 %v2890_v9, 0.0  ;;  %v2888_v38 = vadd.f32 %v3800_v27, %v2880_v14  ;;  %v2883_v43 = vadd.f32 %v3265_v62, %v2868_v17  ;;  %v2866_v16 = vmul.f32 %v3264_v24, %v2830_v40 }
 0x336   : > { %v3672_v2 = vpop.f32.mrf.mxu1 }
 0x337   : > { %2906 = vst [vmem:[%s4539_s15 + $0x10] sm:$0xff] %v2898_v11  ;;  %v2896_v1 = vmax.f32 %v2888_v38, 0.0  ;;  %v2891_v23 = vadd.f32 %v3801_v19, %v2883_v43  ;;  %v2881_v26 = vadd.f32 %v3265_v62, %v2866_v16  ;;  %v2871_v10 = vmul.f32 %v3672_v2, %v3264_v24 }
 0x338   : > { %v2843_v18 = vpop.f32.mrf.mxu1 }
 0x339   : > { %2904 = vst [vmem:[%s4539_s15] sm:$0xff] %v2896_v1  ;;  %v2899_v33 = vmax.f32 %v2891_v23, 0.0  ;;  %v2889_v29 = vadd.f32 %v3802_v63, %v2881_v26  ;;  %v2886_v20 = vadd.f32 %v3265_v62, %v2871_v10  ;;  %v2869_v44 = vmul.f32 %v3264_v24, %v2843_v18 }
 0x33a   : > { %v3673_v49 = vpop.f32.mrf.mxu1 }
 0x33b   : > { %2907 = vst [vmem:[%s4539_s15 + $0x18] sm:$0xff] %v2899_v33  ;;  %v2897_v37 = vmax.f32 %v2889_v29, 0.0  ;;  %v2894_v39 = vadd.f32 %v3803_v47, %v2886_v20  ;;  %v2884_v36 = vadd.f32 %v3265_v62, %v2869_v44  ;;  %v2872_v28 = vmul.f32 %v3673_v49, %v3264_v24 }
 0x33c   : > { %v2846_v41 = vpop.f32.mrf.mxu1 }
 0x33d   : > { %2905 = vst [vmem:[%s4539_s15 + $0x8] sm:$0xff] %v2897_v37  ;;  %v2902_v55 = vmax.f32 %v2894_v39, 0.0  ;;  %v2892_v46 = vadd.f32 %v3804_v8, %v2884_v36  ;;  %v2887_v13 = vadd.f32 %v3265_v62, %v2872_v28  ;;  %v2870_v30 = vmul.f32 %v3264_v24, %v2846_v41 }
 0x33f   : > { %2910 = vst [vmem:[%s4539_s15 + $0x30] sm:$0xff] %v2902_v55  ;;  %v2900_v22 = vmax.f32 %v2892_v46, 0.0  ;;  %v2895_v32 = vadd.f32 %v3805_v34, %v2887_v13  ;;  %v2885_v7 = vadd.f32 %v3265_v62, %v2870_v30 }
 0x341   : > { %2908 = vst [vmem:[%s4539_s15 + $0x20] sm:$0xff] %v2900_v22  ;;  %v2903_v48 = vmax.f32 %v2895_v32, 0.0  ;;  %v2893_v5 = vadd.f32 %v3806_v15, %v2885_v7 }
 0x343   : > { %2911 = vst [vmem:[%s4539_s15 + $0x38] sm:$0xff] %v2903_v48  ;;  %v2901_v25 = vmax.f32 %v2893_v5, 0.0 }
 0x345   : > { %2909 = vst [vmem:[%s4539_s15 + $0x28] sm:$0xff] %v2901_v25 }
 0x346 PF: > { %s20_s13 = sadd.s32 1, %s3813_s13  }
 0x347   : > { %p17_p4 = scmp.ge.s32.totalorder %s20_s13, 4  }
 0x349   :  { %19 = sbr.rel (!%p17_p4) target bundleno = 1 (0x1), region = 100 }

</bundles_post_ra>
